<compile_context>
chip_gen: v5e
topology: v5e:2x2
jax: 0.10.0
libtpu: 0.0.40
codegen_flags: <defaults>
</compile_context>

<pallas_src>
import functools

import jax
import jax.numpy as jnp
from jax.experimental import pallas as pl
from jax.experimental.pallas import tpu as pltpu


# ----------------------------- Pallas kernel ------------------------------ #

def _decoder_kernel(x_ref, w123_ref, b123_ref, g_ref, be_ref,
                    w4_ref, b4_ref, p_ref, o_ref, pad_ref,
                    *, B, H, W, C, eps):
    """Whole decoder, all B images at once. Activations are (B, H, W*C) lane-dense.

    x_ref    : (B, H, W*C)        input, lane index = w*C + c
    w123_ref : (3, 3, W*C, W*C)   [stage, dy] banded conv weights (width pad folded in)
    b123_ref : (3, 1, W*C)        conv1..3 biases tiled across w
    g_ref    : (3, B, W*C)        AdaIN gammas tiled across w
    be_ref   : (3, B, W*C)        AdaIN betas tiled across w
    w4_ref   : (3, W*C, W*Coutp)  conv4 banded weight (out channels zero-padded)
    b4_ref   : (1, W*Coutp)       conv4 bias tiled
    p_ref    : (W*C, W*C)         channel projector / (H*W)
    o_ref    : (B*H, W*Coutp)     lane-dense output
    pad_ref  : (B, H+2, W*C)      persistent height-padding scratch
    """
    WC = W * C
    BH = B * H

    # Zero the scratch once; every stage only overwrites rows 1..H, so the
    # border rows stay zero (the height zero-padding) for all four convs.
    pad_ref[...] = jnp.zeros_like(pad_ref)

    def conv3x3(act3, w_dy, bias):
        # act3: (B, H, WC).  Store into the padded scratch, then the whole 3x3
        # conv is three accumulated row-shifted (B*H, WC) @ (WC, N) MXU dots
        # (width boundary taps are zero columns already folded into w_dy).
        pad_ref[:, 1:H + 1, :] = act3
        padv = pad_ref[...]                                    # (B, H+2, WC)
        y = None
        for dy in range(3):
            lhs = padv[:, dy:dy + H, :].reshape(BH, WC)
            d = jnp.dot(lhs, w_dy[dy], preferred_element_type=jnp.float32)
            y = d if y is None else y + d
        return y + bias                                        # (BH, N)

    def adain(y2d, gamma, beta):
        # Per-(b, c) instance norm on the lane-dense layout (channel = lane % C).
        # One fused (2B, WC) @ (WC, WC) projector matmul yields per-channel
        # E[x] and E[x^2] broadcast back across w; var = E[x^2] - mean^2.
        y3 = y2d.reshape(B, H, WC)
        s1 = jnp.sum(y3, axis=1)                               # (B, WC)
        s2 = jnp.sum(y3 * y3, axis=1)                          # (B, WC)
        stats = jnp.concatenate([s1, s2], axis=0)              # (2B, WC)
        proj = jnp.dot(stats, p_ref[...],
                       preferred_element_type=jnp.float32)     # (2B, WC)
        mean, ex2 = proj[:B], proj[B:]
        var = ex2 - mean * mean
        inv = jax.lax.rsqrt(var + eps)                         # EUP rsqrt
        scale = gamma * inv                                    # (B, WC)
        shift = beta - mean * scale
        return y3 * scale[:, None, :] + shift[:, None, :]      # (B, H, WC)

    act3 = x_ref[...]
    for s in range(3):
        w_s = [w123_ref[s, dy] for dy in range(3)]
        y2d = conv3x3(act3, w_s, b123_ref[s])
        act3 = adain(y2d, g_ref[s], be_ref[s])
    w4s = [w4_ref[dy] for dy in range(3)]
    o_ref[...] = jnp.tanh(conv3x3(act3, w4s, b4_ref[...]))


# ------------------- one-time operand preparation -------------------------- #

def _band_dy(w_oihw, W, cout_pad):
    """(Cout, Cin, 3, 3) -> (3, W*Cin, W*cout_pad) per-dy banded conv matrices.

    band[dy][wsrc*Cin + ci, wdst*cout_pad + co] = w[co, ci, dy, wsrc - wdst + 1]
    (zero when the tap falls outside the 3-wide kernel, i.e. width zero-padding
    is folded into the weight; height padding is handled by the VMEM scratch).
    """
    Cout, Cin, KH, KW = w_oihw.shape
    w = jnp.transpose(w_oihw, (2, 3, 1, 0)).astype(jnp.float32)   # (KH,KW,Cin,Cout)
    if cout_pad != Cout:
        w = jnp.pad(w, ((0, 0), (0, 0), (0, 0), (0, cout_pad - Cout)))
    wsrc = jnp.arange(W)[:, None]
    wdst = jnp.arange(W)[None, :]
    dx = wsrc - wdst + 1                                          # (W, W)
    valid = ((dx >= 0) & (dx < KW)).astype(jnp.float32)
    taps = w[:, jnp.clip(dx, 0, KW - 1)]                          # (KH,W,W,Cin,Cp)
    band = taps * valid[None, :, :, None, None]
    band = jnp.transpose(band, (0, 1, 3, 2, 4))                   # (KH,wsrc,Cin,wdst,Cp)
    return band.reshape(KH, W * Cin, W * cout_pad)


def _tile_bias(b, W, cout_pad=None):
    b = b.astype(jnp.float32)
    if cout_pad is not None and cout_pad != b.shape[0]:
        b = jnp.pad(b, (0, cout_pad - b.shape[0]))
    n = b.shape[0]
    return jnp.tile(b, W).reshape(1, W * n)


def _tile_adain(v, B, C, W):
    # v: (B*C,) indexed b*C + c  ->  (B, W*C) with [b, w*C + c] = v[b*C + c]
    v = v.astype(jnp.float32).reshape(B, 1, C)
    return jnp.broadcast_to(v, (B, W, C)).reshape(B, W * C)


def prepare_decoder(params, B, H, W):
    """One-time operand prep (hoisted out of the per-call forward path)."""
    C = params["conv1_w_oihw"].shape[1]
    Cout = params["conv4_w_oihw"].shape[0]
    coutp = Cout
    while (W * coutp) % 128 != 0:          # pad out-channels -> lane-dense output
        coutp += 1
    WC = W * C
    lane = jnp.arange(WC)
    proj = ((lane[:, None] % C) == (lane[None, :] % C)).astype(jnp.float32)
    proj = proj / float(H * W)             # channel projector, shared by 3 AdaINs

    return {
        "w123": jnp.stack([_band_dy(params[f"conv{i}_w_oihw"], W, C)
                           for i in (1, 2, 3)]),                    # (3,3,WC,WC)
        "b123": jnp.stack([_tile_bias(params[f"conv{i}_b"], W)
                           for i in (1, 2, 3)]),                    # (3,1,WC)
        "g": jnp.stack([_tile_adain(params[f"adain{i}_weight"], B, C, W)
                        for i in (1, 2, 3)]),                       # (3,B,WC)
        "be": jnp.stack([_tile_adain(params[f"adain{i}_bias"], B, C, W)
                         for i in (1, 2, 3)]),                      # (3,B,WC)
        "w4": _band_dy(params["conv4_w_oihw"], W, coutp),           # (3,WC,W*coutp)
        "b4": _tile_bias(params["conv4_b"], W, coutp),              # (1,W*coutp)
        "proj": proj,                                               # (WC,WC)
    }


# --------------------------- Decoder forward ------------------------------ #

def decoder_forward(x_nchw, prep, *, out_channel):
    """Decoder.forward equivalent (NCHW in / NCHW out); one fused Pallas kernel."""
    B, C, H, W = x_nchw.shape
    WC = W * C
    coutp = prep["w4"].shape[2] // W
    x_folded = jnp.transpose(x_nchw, (0, 2, 3, 1)).reshape(B, H, WC)

    kernel = functools.partial(_decoder_kernel, B=B, H=H, W=W, C=C, eps=1e-5)

    out2d = pl.pallas_call(
        kernel,
        out_shape=jax.ShapeDtypeStruct((B * H, W * coutp), jnp.float32),
        scratch_shapes=[pltpu.VMEM((B, H + 2, WC), jnp.float32)],
    )(x_folded, prep["w123"], prep["b123"], prep["g"], prep["be"],
      prep["w4"], prep["b4"], prep["proj"])

    out = out2d.reshape(B, H, W, coutp)[..., :out_channel]
    return jnp.transpose(out, (0, 3, 1, 2))


# ------------------------- Pure-JAX reference ------------------------------ #

def _ref_conv(x, w_oihw, b):
    y = jax.lax.conv_general_dilated(
        x, w_oihw, window_strides=(1, 1), padding=((1, 1), (1, 1)),
        dimension_numbers=("NCHW", "OIHW", "NCHW"),
        precision=jax.lax.Precision.HIGHEST)
    return y + b[None, :, None, None]


def _ref_adain(x, weight, bias, eps=1e-5):
    B, C, H, W = x.shape
    mean = x.mean(axis=(2, 3), keepdims=True)
    var = x.var(axis=(2, 3), keepdims=True)          # biased, like batch_norm
    xn = (x - mean) / jnp.sqrt(var + eps)
    g = weight.reshape(B, C, 1, 1)
    b = bias.reshape(B, C, 1, 1)
    return g * xn + b


def decoder_ref(x, params):
    out = x
    for i in (1, 2, 3):
        out = _ref_conv(out, params[f"conv{i}_w_oihw"], params[f"conv{i}_b"])
        out = _ref_adain(out, params[f"adain{i}_weight"], params[f"adain{i}_bias"])
    out = _ref_conv(out, params["conv4_w_oihw"], params["conv4_b"])
    return jnp.tanh(out)


# --------------------------------- main ------------------------------------ #

def make_params(key, B, dim, out_channel):
    params = {}
    ks = jax.random.split(key, 16)
    ki = 0

    def conv_init(cin, cout):
        nonlocal ki
        scale = 1.0 / jnp.sqrt(cin * 9.0)
        w = scale * jax.random.normal(ks[ki], (cout, cin, 3, 3), jnp.float32)
        ki += 1
        b = 0.05 * jax.random.normal(ks[ki], (cout,), jnp.float32)
        ki += 1
        return w, b

    chans = [(dim, dim), (dim, dim), (dim, dim), (dim, out_channel)]
    for i, (cin, cout) in enumerate(chans, start=1):
        w_oihw, b = conv_init(cin, cout)
        params[f"conv{i}_w_oihw"] = w_oihw
        params[f"conv{i}_b"] = b

    # AdaIN weight/bias are assigned externally in the PyTorch code; shape
    # (B * num_features,), indexed as b * C + c. Deterministic synthetic values.
    for i in (1, 2, 3):
        params[f"adain{i}_weight"] = (
            1.0 + 0.2 * jax.random.normal(ks[ki], (B * dim,), jnp.float32)); ki += 1
        params[f"adain{i}_bias"] = (
            0.1 * jax.random.normal(ks[ki], (B * dim,), jnp.float32)); ki += 1

    # TODO(synk): running_mean/running_var momentum updates are stateful buffers
    # that do not affect the forward output (training=True path) and are omitted.
    return params


if __name__ == "__main__":
    B, dim, out_channel, H, W = 2, 8, 4, 16, 16   # W*dim = 128 -> lane-dense

    key = jax.random.PRNGKey(0)
    kx, kp = jax.random.split(key)
    x = jax.random.normal(kx, (B, dim, H, W), jnp.float32)
    params = make_params(kp, B, dim, out_channel)

    prep = prepare_decoder(params, B, H, W)       # one-time (hoisted) operand prep
    fwd = jax.jit(functools.partial(decoder_forward, out_channel=out_channel))
    out = jax.block_until_ready(fwd(x, prep))

    ref = jax.block_until_ready(decoder_ref(x, params))
    assert out.shape == (B, out_channel, H, W), out.shape
    assert jnp.allclose(out, ref, atol=5e-3, rtol=5e-3), (
        float(jnp.max(jnp.abs(out - ref))))

    print("KERNEL_OK")
</pallas_src>

<mosaic_0001>
module attributes {stable_mosaic.version = 11 : i64} {
  func.func @_decoder_kernel(%arg0: memref<2x16x128xf32, #tpu.memory_space<vmem>>, %arg1: memref<3x3x128x128xf32, #tpu.memory_space<vmem>>, %arg2: memref<3x1x128xf32, #tpu.memory_space<vmem>>, %arg3: memref<3x2x128xf32, #tpu.memory_space<vmem>>, %arg4: memref<3x2x128xf32, #tpu.memory_space<vmem>>, %arg5: memref<3x128x128xf32, #tpu.memory_space<vmem>>, %arg6: memref<1x128xf32, #tpu.memory_space<vmem>>, %arg7: memref<128x128xf32, #tpu.memory_space<vmem>>, %arg8: memref<32x128xf32, #tpu.memory_space<vmem>>, %arg9: memref<2x18x128xf32, #tpu.memory_space<vmem>>) attributes {dimension_semantics = [], scalar_prefetch = 0 : i64, scratch_operands = 1 : i64, tpu.core_type = #tpu.core_type<tc>} {
    %cst = arith.constant 0.000000e+00 : f32
    %0 = vector.broadcast %cst : f32 to vector<2x18x128xf32>
    %c0 = arith.constant 0 : index
    %c0_0 = arith.constant 0 : index
    %c0_1 = arith.constant 0 : index
    %1 = vector.load %arg9[%c0, %c0_0, %c0_1] : memref<2x18x128xf32, #tpu.memory_space<vmem>>, vector<2x18x128xf32>
    tpu.vector_store %arg9[%c0, %c0_0, %c0_1], %0 {strides = array<i32>} : memref<2x18x128xf32, #tpu.memory_space<vmem>>, vector<2x18x128xf32>,
    %c0_2 = arith.constant 0 : index
    %c0_3 = arith.constant 0 : index
    %c0_4 = arith.constant 0 : index
    %2 = vector.load %arg0[%c0_2, %c0_3, %c0_4] : memref<2x16x128xf32, #tpu.memory_space<vmem>>, vector<2x16x128xf32>
    %c0_5 = arith.constant 0 : index
    %c0_6 = arith.constant 0 : index
    %c0_7 = arith.constant 0 : index
    %c0_8 = arith.constant 0 : index
    %3 = vector.load %arg1[%c0_5, %c0_6, %c0_7, %c0_8] : memref<3x3x128x128xf32, #tpu.memory_space<vmem>>, vector<1x1x128x128xf32>
    %4 = vector.shape_cast %3 : vector<1x1x128x128xf32> to vector<128x128xf32>
    %c0_9 = arith.constant 0 : index
    %c1 = arith.constant 1 : index
    %c0_10 = arith.constant 0 : index
    %c0_11 = arith.constant 0 : index
    %5 = vector.load %arg1[%c0_9, %c1, %c0_10, %c0_11] : memref<3x3x128x128xf32, #tpu.memory_space<vmem>>, vector<1x1x128x128xf32>
    %6 = vector.shape_cast %5 : vector<1x1x128x128xf32> to vector<128x128xf32>
    %c0_12 = arith.constant 0 : index
    %c2 = arith.constant 2 : index
    %c0_13 = arith.constant 0 : index
    %c0_14 = arith.constant 0 : index
    %7 = vector.load %arg1[%c0_12, %c2, %c0_13, %c0_14] : memref<3x3x128x128xf32, #tpu.memory_space<vmem>>, vector<1x1x128x128xf32>
    %8 = vector.shape_cast %7 : vector<1x1x128x128xf32> to vector<128x128xf32>
    %c0_15 = arith.constant 0 : index
    %c0_16 = arith.constant 0 : index
    %c0_17 = arith.constant 0 : index
    %9 = vector.load %arg2[%c0_15, %c0_16, %c0_17] : memref<3x1x128xf32, #tpu.memory_space<vmem>>, vector<1x1x128xf32>
    %10 = vector.shape_cast %9 : vector<1x1x128xf32> to vector<1x128xf32>
    %c0_18 = arith.constant 0 : index
    %c1_19 = arith.constant 1 : index
    %c0_20 = arith.constant 0 : index
    %11 = vector.load %arg9[%c0_18, %c1_19, %c0_20] : memref<2x18x128xf32, #tpu.memory_space<vmem>>, vector<2x16x128xf32>
    tpu.vector_store %arg9[%c0_18, %c1_19, %c0_20], %2 {strides = array<i32>} : memref<2x18x128xf32, #tpu.memory_space<vmem>>, vector<2x16x128xf32>,
    %c0_21 = arith.constant 0 : index
    %c0_22 = arith.constant 0 : index
    %c0_23 = arith.constant 0 : index
    %12 = vector.load %arg9[%c0_21, %c0_22, %c0_23] : memref<2x18x128xf32, #tpu.memory_space<vmem>>, vector<2x18x128xf32>
    %13 = vector.extract_strided_slice %12 {offsets = [0, 0, 0], sizes = [2, 16, 128], strides = [1, 1, 1]} : vector<2x18x128xf32> to vector<2x16x128xf32>
    %14 = vector.shape_cast %13 : vector<2x16x128xf32> to vector<32x128xf32>
    %cst_24 = arith.constant dense<0.000000e+00> : vector<32x128xf32>
    %15 = tpu.matmul %14, %4, %cst_24 {dimension_numbers = #tpu.dot_dimension_numbers<[1], [0], [0], [1], [0, 0, 1, 1], [], []>} : vector<32x128xf32>, vector<128x128xf32>, vector<32x128xf32> -> vector<32x128xf32>
    %16 = vector.extract_strided_slice %12 {offsets = [0, 1, 0], sizes = [2, 16, 128], strides = [1, 1, 1]} : vector<2x18x128xf32> to vector<2x16x128xf32>
    %17 = vector.shape_cast %16 : vector<2x16x128xf32> to vector<32x128xf32>
    %cst_25 = arith.constant dense<0.000000e+00> : vector<32x128xf32>
    %18 = tpu.matmul %17, %6, %cst_25 {dimension_numbers = #tpu.dot_dimension_numbers<[1], [0], [0], [1], [0, 0, 1, 1], [], []>} : vector<32x128xf32>, vector<128x128xf32>, vector<32x128xf32> -> vector<32x128xf32>
    %19 = arith.addf %15, %18 : vector<32x128xf32>
    %20 = vector.extract_strided_slice %12 {offsets = [0, 2, 0], sizes = [2, 16, 128], strides = [1, 1, 1]} : vector<2x18x128xf32> to vector<2x16x128xf32>
    %21 = vector.shape_cast %20 : vector<2x16x128xf32> to vector<32x128xf32>
    %cst_26 = arith.constant dense<0.000000e+00> : vector<32x128xf32>
    %22 = tpu.matmul %21, %8, %cst_26 {dimension_numbers = #tpu.dot_dimension_numbers<[1], [0], [0], [1], [0, 0, 1, 1], [], []>} : vector<32x128xf32>, vector<128x128xf32>, vector<32x128xf32> -> vector<32x128xf32>
    %23 = arith.addf %19, %22 : vector<32x128xf32>
    %24 = vector.broadcast %10 : vector<1x128xf32> to vector<32x128xf32>
    %25 = arith.addf %23, %24 : vector<32x128xf32>
    %c0_27 = arith.constant 0 : index
    %c0_28 = arith.constant 0 : index
    %c0_29 = arith.constant 0 : index
    %26 = vector.load %arg3[%c0_27, %c0_28, %c0_29] : memref<3x2x128xf32, #tpu.memory_space<vmem>>, vector<1x2x128xf32>
    %27 = vector.shape_cast %26 : vector<1x2x128xf32> to vector<2x128xf32>
    %c0_30 = arith.constant 0 : index
    %c0_31 = arith.constant 0 : index
    %c0_32 = arith.constant 0 : index
    %28 = vector.load %arg4[%c0_30, %c0_31, %c0_32] : memref<3x2x128xf32, #tpu.memory_space<vmem>>, vector<1x2x128xf32>
    %29 = vector.shape_cast %28 : vector<1x2x128xf32> to vector<2x128xf32>
    %30 = vector.shape_cast %25 : vector<32x128xf32> to vector<2x16x128xf32>
    %cst_33 = arith.constant dense<0.000000e+00> : vector<2x128xf32>
    %31 = vector.multi_reduction <add>, %30, %cst_33 [1] : vector<2x16x128xf32> to vector<2x128xf32>
    %32 = arith.mulf %30, %30 : vector<2x16x128xf32>
    %cst_34 = arith.constant dense<0.000000e+00> : vector<2x128xf32>
    %33 = vector.multi_reduction <add>, %32, %cst_34 [1] : vector<2x16x128xf32> to vector<2x128xf32>
    %34 = tpu.concatenate %31, %33 in 0 : vector<2x128xf32>, vector<2x128xf32> -> vector<4x128xf32>
    %c0_35 = arith.constant 0 : index
    %c0_36 = arith.constant 0 : index
    %35 = vector.load %arg7[%c0_35, %c0_36] : memref<128x128xf32, #tpu.memory_space<vmem>>, vector<128x128xf32>
    %cst_37 = arith.constant dense<0.000000e+00> : vector<4x128xf32>
    %36 = tpu.matmul %34, %35, %cst_37 {dimension_numbers = #tpu.dot_dimension_numbers<[1], [0], [0], [1], [0, 0, 1, 1], [], []>} : vector<4x128xf32>, vector<128x128xf32>, vector<4x128xf32> -> vector<4x128xf32>
    %37 = vector.extract_strided_slice %36 {offsets = [0, 0], sizes = [2, 128], strides = [1, 1]} : vector<4x128xf32> to vector<2x128xf32>
    %38 = vector.extract_strided_slice %36 {offsets = [2, 0], sizes = [2, 128], strides = [1, 1]} : vector<4x128xf32> to vector<2x128xf32>
    %39 = arith.mulf %37, %37 : vector<2x128xf32>
    %40 = arith.subf %38, %39 : vector<2x128xf32>
    %cst_38 = arith.constant 9.99999974E-6 : f32
    %41 = vector.broadcast %cst_38 : f32 to vector<2x128xf32>
    %42 = arith.addf %40, %41 : vector<2x128xf32>
    %43 = math.rsqrt %42 : vector<2x128xf32>
    %44 = arith.mulf %27, %43 : vector<2x128xf32>
    %45 = arith.mulf %37, %44 : vector<2x128xf32>
    %46 = arith.subf %29, %45 : vector<2x128xf32>
    %47 = vector.shape_cast %44 : vector<2x128xf32> to vector<2x1x128xf32>
    %48 = vector.broadcast %47 : vector<2x1x128xf32> to vector<2x16x128xf32>
    %49 = arith.mulf %30, %48 : vector<2x16x128xf32>
    %50 = vector.shape_cast %46 : vector<2x128xf32> to vector<2x1x128xf32>
    %51 = vector.broadcast %50 : vector<2x1x128xf32> to vector<2x16x128xf32>
    %52 = arith.addf %49, %51 : vector<2x16x128xf32>
    %c1_39 = arith.constant 1 : index
    %c0_40 = arith.constant 0 : index
    %c0_41 = arith.constant 0 : index
    %c0_42 = arith.constant 0 : index
    %53 = vector.load %arg1[%c1_39, %c0_40, %c0_41, %c0_42] : memref<3x3x128x128xf32, #tpu.memory_space<vmem>>, vector<1x1x128x128xf32>
    %54 = vector.shape_cast %53 : vector<1x1x128x128xf32> to vector<128x128xf32>
    %c1_43 = arith.constant 1 : index
    %c1_44 = arith.constant 1 : index
    %c0_45 = arith.constant 0 : index
    %c0_46 = arith.constant 0 : index
    %55 = vector.load %arg1[%c1_43, %c1_44, %c0_45, %c0_46] : memref<3x3x128x128xf32, #tpu.memory_space<vmem>>, vector<1x1x128x128xf32>
    %56 = vector.shape_cast %55 : vector<1x1x128x128xf32> to vector<128x128xf32>
    %c1_47 = arith.constant 1 : index
    %c2_48 = arith.constant 2 : index
    %c0_49 = arith.constant 0 : index
    %c0_50 = arith.constant 0 : index
    %57 = vector.load %arg1[%c1_47, %c2_48, %c0_49, %c0_50] : memref<3x3x128x128xf32, #tpu.memory_space<vmem>>, vector<1x1x128x128xf32>
    %58 = vector.shape_cast %57 : vector<1x1x128x128xf32> to vector<128x128xf32>
    %c1_51 = arith.constant 1 : index
    %c0_52 = arith.constant 0 : index
    %c0_53 = arith.constant 0 : index
    %59 = vector.load %arg2[%c1_51, %c0_52, %c0_53] : memref<3x1x128xf32, #tpu.memory_space<vmem>>, vector<1x1x128xf32>
    %60 = vector.shape_cast %59 : vector<1x1x128xf32> to vector<1x128xf32>
    %c0_54 = arith.constant 0 : index
    %c1_55 = arith.constant 1 : index
    %c0_56 = arith.constant 0 : index
    %61 = vector.load %arg9[%c0_54, %c1_55, %c0_56] : memref<2x18x128xf32, #tpu.memory_space<vmem>>, vector<2x16x128xf32>
    tpu.vector_store %arg9[%c0_54, %c1_55, %c0_56], %52 {strides = array<i32>} : memref<2x18x128xf32, #tpu.memory_space<vmem>>, vector<2x16x128xf32>,
    %c0_57 = arith.constant 0 : index
    %c0_58 = arith.constant 0 : index
    %c0_59 = arith.constant 0 : index
    %62 = vector.load %arg9[%c0_57, %c0_58, %c0_59] : memref<2x18x128xf32, #tpu.memory_space<vmem>>, vector<2x18x128xf32>
    %63 = vector.extract_strided_slice %62 {offsets = [0, 0, 0], sizes = [2, 16, 128], strides = [1, 1, 1]} : vector<2x18x128xf32> to vector<2x16x128xf32>
    %64 = vector.shape_cast %63 : vector<2x16x128xf32> to vector<32x128xf32>
    %cst_60 = arith.constant dense<0.000000e+00> : vector<32x128xf32>
    %65 = tpu.matmul %64, %54, %cst_60 {dimension_numbers = #tpu.dot_dimension_numbers<[1], [0], [0], [1], [0, 0, 1, 1], [], []>} : vector<32x128xf32>, vector<128x128xf32>, vector<32x128xf32> -> vector<32x128xf32>
    %66 = vector.extract_strided_slice %62 {offsets = [0, 1, 0], sizes = [2, 16, 128], strides = [1, 1, 1]} : vector<2x18x128xf32> to vector<2x16x128xf32>
    %67 = vector.shape_cast %66 : vector<2x16x128xf32> to vector<32x128xf32>
    %cst_61 = arith.constant dense<0.000000e+00> : vector<32x128xf32>
    %68 = tpu.matmul %67, %56, %cst_61 {dimension_numbers = #tpu.dot_dimension_numbers<[1], [0], [0], [1], [0, 0, 1, 1], [], []>} : vector<32x128xf32>, vector<128x128xf32>, vector<32x128xf32> -> vector<32x128xf32>
    %69 = arith.addf %65, %68 : vector<32x128xf32>
    %70 = vector.extract_strided_slice %62 {offsets = [0, 2, 0], sizes = [2, 16, 128], strides = [1, 1, 1]} : vector<2x18x128xf32> to vector<2x16x128xf32>
    %71 = vector.shape_cast %70 : vector<2x16x128xf32> to vector<32x128xf32>
    %cst_62 = arith.constant dense<0.000000e+00> : vector<32x128xf32>
    %72 = tpu.matmul %71, %58, %cst_62 {dimension_numbers = #tpu.dot_dimension_numbers<[1], [0], [0], [1], [0, 0, 1, 1], [], []>} : vector<32x128xf32>, vector<128x128xf32>, vector<32x128xf32> -> vector<32x128xf32>
    %73 = arith.addf %69, %72 : vector<32x128xf32>
    %74 = vector.broadcast %60 : vector<1x128xf32> to vector<32x128xf32>
    %75 = arith.addf %73, %74 : vector<32x128xf32>
    %c1_63 = arith.constant 1 : index
    %c0_64 = arith.constant 0 : index
    %c0_65 = arith.constant 0 : index
    %76 = vector.load %arg3[%c1_63, %c0_64, %c0_65] : memref<3x2x128xf32, #tpu.memory_space<vmem>>, vector<1x2x128xf32>
    %77 = vector.shape_cast %76 : vector<1x2x128xf32> to vector<2x128xf32>
    %c1_66 = arith.constant 1 : index
    %c0_67 = arith.constant 0 : index
    %c0_68 = arith.constant 0 : index
    %78 = vector.load %arg4[%c1_66, %c0_67, %c0_68] : memref<3x2x128xf32, #tpu.memory_space<vmem>>, vector<1x2x128xf32>
    %79 = vector.shape_cast %78 : vector<1x2x128xf32> to vector<2x128xf32>
    %80 = vector.shape_cast %75 : vector<32x128xf32> to vector<2x16x128xf32>
    %cst_69 = arith.constant dense<0.000000e+00> : vector<2x128xf32>
    %81 = vector.multi_reduction <add>, %80, %cst_69 [1] : vector<2x16x128xf32> to vector<2x128xf32>
    %82 = arith.mulf %80, %80 : vector<2x16x128xf32>
    %cst_70 = arith.constant dense<0.000000e+00> : vector<2x128xf32>
    %83 = vector.multi_reduction <add>, %82, %cst_70 [1] : vector<2x16x128xf32> to vector<2x128xf32>
    %84 = tpu.concatenate %81, %83 in 0 : vector<2x128xf32>, vector<2x128xf32> -> vector<4x128xf32>
    %c0_71 = arith.constant 0 : index
    %c0_72 = arith.constant 0 : index
    %85 = vector.load %arg7[%c0_71, %c0_72] : memref<128x128xf32, #tpu.memory_space<vmem>>, vector<128x128xf32>
    %cst_73 = arith.constant dense<0.000000e+00> : vector<4x128xf32>
    %86 = tpu.matmul %84, %85, %cst_73 {dimension_numbers = #tpu.dot_dimension_numbers<[1], [0], [0], [1], [0, 0, 1, 1], [], []>} : vector<4x128xf32>, vector<128x128xf32>, vector<4x128xf32> -> vector<4x128xf32>
    %87 = vector.extract_strided_slice %86 {offsets = [0, 0], sizes = [2, 128], strides = [1, 1]} : vector<4x128xf32> to vector<2x128xf32>
    %88 = vector.extract_strided_slice %86 {offsets = [2, 0], sizes = [2, 128], strides = [1, 1]} : vector<4x128xf32> to vector<2x128xf32>
    %89 = arith.mulf %87, %87 : vector<2x128xf32>
    %90 = arith.subf %88, %89 : vector<2x128xf32>
    %cst_74 = arith.constant 9.99999974E-6 : f32
    %91 = vector.broadcast %cst_74 : f32 to vector<2x128xf32>
    %92 = arith.addf %90, %91 : vector<2x128xf32>
    %93 = math.rsqrt %92 : vector<2x128xf32>
    %94 = arith.mulf %77, %93 : vector<2x128xf32>
    %95 = arith.mulf %87, %94 : vector<2x128xf32>
    %96 = arith.subf %79, %95 : vector<2x128xf32>
    %97 = vector.shape_cast %94 : vector<2x128xf32> to vector<2x1x128xf32>
    %98 = vector.broadcast %97 : vector<2x1x128xf32> to vector<2x16x128xf32>
    %99 = arith.mulf %80, %98 : vector<2x16x128xf32>
    %100 = vector.shape_cast %96 : vector<2x128xf32> to vector<2x1x128xf32>
    %101 = vector.broadcast %100 : vector<2x1x128xf32> to vector<2x16x128xf32>
    %102 = arith.addf %99, %101 : vector<2x16x128xf32>
    %c2_75 = arith.constant 2 : index
    %c0_76 = arith.constant 0 : index
    %c0_77 = arith.constant 0 : index
    %c0_78 = arith.constant 0 : index
    %103 = vector.load %arg1[%c2_75, %c0_76, %c0_77, %c0_78] : memref<3x3x128x128xf32, #tpu.memory_space<vmem>>, vector<1x1x128x128xf32>
    %104 = vector.shape_cast %103 : vector<1x1x128x128xf32> to vector<128x128xf32>
    %c2_79 = arith.constant 2 : index
    %c1_80 = arith.constant 1 : index
    %c0_81 = arith.constant 0 : index
    %c0_82 = arith.constant 0 : index
    %105 = vector.load %arg1[%c2_79, %c1_80, %c0_81, %c0_82] : memref<3x3x128x128xf32, #tpu.memory_space<vmem>>, vector<1x1x128x128xf32>
    %106 = vector.shape_cast %105 : vector<1x1x128x128xf32> to vector<128x128xf32>
    %c2_83 = arith.constant 2 : index
    %c2_84 = arith.constant 2 : index
    %c0_85 = arith.constant 0 : index
    %c0_86 = arith.constant 0 : index
    %107 = vector.load %arg1[%c2_83, %c2_84, %c0_85, %c0_86] : memref<3x3x128x128xf32, #tpu.memory_space<vmem>>, vector<1x1x128x128xf32>
    %108 = vector.shape_cast %107 : vector<1x1x128x128xf32> to vector<128x128xf32>
    %c2_87 = arith.constant 2 : index
    %c0_88 = arith.constant 0 : index
    %c0_89 = arith.constant 0 : index
    %109 = vector.load %arg2[%c2_87, %c0_88, %c0_89] : memref<3x1x128xf32, #tpu.memory_space<vmem>>, vector<1x1x128xf32>
    %110 = vector.shape_cast %109 : vector<1x1x128xf32> to vector<1x128xf32>
    %c0_90 = arith.constant 0 : index
    %c1_91 = arith.constant 1 : index
    %c0_92 = arith.constant 0 : index
    %111 = vector.load %arg9[%c0_90, %c1_91, %c0_92] : memref<2x18x128xf32, #tpu.memory_space<vmem>>, vector<2x16x128xf32>
    tpu.vector_store %arg9[%c0_90, %c1_91, %c0_92], %102 {strides = array<i32>} : memref<2x18x128xf32, #tpu.memory_space<vmem>>, vector<2x16x128xf32>,
    %c0_93 = arith.constant 0 : index
    %c0_94 = arith.constant 0 : index
    %c0_95 = arith.constant 0 : index
    %112 = vector.load %arg9[%c0_93, %c0_94, %c0_95] : memref<2x18x128xf32, #tpu.memory_space<vmem>>, vector<2x18x128xf32>
    %113 = vector.extract_strided_slice %112 {offsets = [0, 0, 0], sizes = [2, 16, 128], strides = [1, 1, 1]} : vector<2x18x128xf32> to vector<2x16x128xf32>
    %114 = vector.shape_cast %113 : vector<2x16x128xf32> to vector<32x128xf32>
    %cst_96 = arith.constant dense<0.000000e+00> : vector<32x128xf32>
    %115 = tpu.matmul %114, %104, %cst_96 {dimension_numbers = #tpu.dot_dimension_numbers<[1], [0], [0], [1], [0, 0, 1, 1], [], []>} : vector<32x128xf32>, vector<128x128xf32>, vector<32x128xf32> -> vector<32x128xf32>
    %116 = vector.extract_strided_slice %112 {offsets = [0, 1, 0], sizes = [2, 16, 128], strides = [1, 1, 1]} : vector<2x18x128xf32> to vector<2x16x128xf32>
    %117 = vector.shape_cast %116 : vector<2x16x128xf32> to vector<32x128xf32>
    %cst_97 = arith.constant dense<0.000000e+00> : vector<32x128xf32>
    %118 = tpu.matmul %117, %106, %cst_97 {dimension_numbers = #tpu.dot_dimension_numbers<[1], [0], [0], [1], [0, 0, 1, 1], [], []>} : vector<32x128xf32>, vector<128x128xf32>, vector<32x128xf32> -> vector<32x128xf32>
    %119 = arith.addf %115, %118 : vector<32x128xf32>
    %120 = vector.extract_strided_slice %112 {offsets = [0, 2, 0], sizes = [2, 16, 128], strides = [1, 1, 1]} : vector<2x18x128xf32> to vector<2x16x128xf32>
    %121 = vector.shape_cast %120 : vector<2x16x128xf32> to vector<32x128xf32>
    %cst_98 = arith.constant dense<0.000000e+00> : vector<32x128xf32>
    %122 = tpu.matmul %121, %108, %cst_98 {dimension_numbers = #tpu.dot_dimension_numbers<[1], [0], [0], [1], [0, 0, 1, 1], [], []>} : vector<32x128xf32>, vector<128x128xf32>, vector<32x128xf32> -> vector<32x128xf32>
    %123 = arith.addf %119, %122 : vector<32x128xf32>
    %124 = vector.broadcast %110 : vector<1x128xf32> to vector<32x128xf32>
    %125 = arith.addf %123, %124 : vector<32x128xf32>
    %c2_99 = arith.constant 2 : index
    %c0_100 = arith.constant 0 : index
    %c0_101 = arith.constant 0 : index
    %126 = vector.load %arg3[%c2_99, %c0_100, %c0_101] : memref<3x2x128xf32, #tpu.memory_space<vmem>>, vector<1x2x128xf32>
    %127 = vector.shape_cast %126 : vector<1x2x128xf32> to vector<2x128xf32>
    %c2_102 = arith.constant 2 : index
    %c0_103 = arith.constant 0 : index
    %c0_104 = arith.constant 0 : index
    %128 = vector.load %arg4[%c2_102, %c0_103, %c0_104] : memref<3x2x128xf32, #tpu.memory_space<vmem>>, vector<1x2x128xf32>
    %129 = vector.shape_cast %128 : vector<1x2x128xf32> to vector<2x128xf32>
    %130 = vector.shape_cast %125 : vector<32x128xf32> to vector<2x16x128xf32>
    %cst_105 = arith.constant dense<0.000000e+00> : vector<2x128xf32>
    %131 = vector.multi_reduction <add>, %130, %cst_105 [1] : vector<2x16x128xf32> to vector<2x128xf32>
    %132 = arith.mulf %130, %130 : vector<2x16x128xf32>
    %cst_106 = arith.constant dense<0.000000e+00> : vector<2x128xf32>
    %133 = vector.multi_reduction <add>, %132, %cst_106 [1] : vector<2x16x128xf32> to vector<2x128xf32>
    %134 = tpu.concatenate %131, %133 in 0 : vector<2x128xf32>, vector<2x128xf32> -> vector<4x128xf32>
    %c0_107 = arith.constant 0 : index
    %c0_108 = arith.constant 0 : index
    %135 = vector.load %arg7[%c0_107, %c0_108] : memref<128x128xf32, #tpu.memory_space<vmem>>, vector<128x128xf32>
    %cst_109 = arith.constant dense<0.000000e+00> : vector<4x128xf32>
    %136 = tpu.matmul %134, %135, %cst_109 {dimension_numbers = #tpu.dot_dimension_numbers<[1], [0], [0], [1], [0, 0, 1, 1], [], []>} : vector<4x128xf32>, vector<128x128xf32>, vector<4x128xf32> -> vector<4x128xf32>
    %137 = vector.extract_strided_slice %136 {offsets = [0, 0], sizes = [2, 128], strides = [1, 1]} : vector<4x128xf32> to vector<2x128xf32>
    %138 = vector.extract_strided_slice %136 {offsets = [2, 0], sizes = [2, 128], strides = [1, 1]} : vector<4x128xf32> to vector<2x128xf32>
    %139 = arith.mulf %137, %137 : vector<2x128xf32>
    %140 = arith.subf %138, %139 : vector<2x128xf32>
    %cst_110 = arith.constant 9.99999974E-6 : f32
    %141 = vector.broadcast %cst_110 : f32 to vector<2x128xf32>
    %142 = arith.addf %140, %141 : vector<2x128xf32>
    %143 = math.rsqrt %142 : vector<2x128xf32>
    %144 = arith.mulf %127, %143 : vector<2x128xf32>
    %145 = arith.mulf %137, %144 : vector<2x128xf32>
    %146 = arith.subf %129, %145 : vector<2x128xf32>
    %147 = vector.shape_cast %144 : vector<2x128xf32> to vector<2x1x128xf32>
    %148 = vector.broadcast %147 : vector<2x1x128xf32> to vector<2x16x128xf32>
    %149 = arith.mulf %130, %148 : vector<2x16x128xf32>
    %150 = vector.shape_cast %146 : vector<2x128xf32> to vector<2x1x128xf32>
    %151 = vector.broadcast %150 : vector<2x1x128xf32> to vector<2x16x128xf32>
    %152 = arith.addf %149, %151 : vector<2x16x128xf32>
    %c0_111 = arith.constant 0 : index
    %c0_112 = arith.constant 0 : index
    %c0_113 = arith.constant 0 : index
    %153 = vector.load %arg5[%c0_111, %c0_112, %c0_113] : memref<3x128x128xf32, #tpu.memory_space<vmem>>, vector<1x128x128xf32>
    %154 = vector.shape_cast %153 : vector<1x128x128xf32> to vector<128x128xf32>
    %c1_114 = arith.constant 1 : index
    %c0_115 = arith.constant 0 : index
    %c0_116 = arith.constant 0 : index
    %155 = vector.load %arg5[%c1_114, %c0_115, %c0_116] : memref<3x128x128xf32, #tpu.memory_space<vmem>>, vector<1x128x128xf32>
    %156 = vector.shape_cast %155 : vector<1x128x128xf32> to vector<128x128xf32>
    %c2_117 = arith.constant 2 : index
    %c0_118 = arith.constant 0 : index
    %c0_119 = arith.constant 0 : index
    %157 = vector.load %arg5[%c2_117, %c0_118, %c0_119] : memref<3x128x128xf32, #tpu.memory_space<vmem>>, vector<1x128x128xf32>
    %158 = vector.shape_cast %157 : vector<1x128x128xf32> to vector<128x128xf32>
    %c0_120 = arith.constant 0 : index
    %c0_121 = arith.constant 0 : index
    %159 = vector.load %arg6[%c0_120, %c0_121] : memref<1x128xf32, #tpu.memory_space<vmem>>, vector<1x128xf32>
    %c0_122 = arith.constant 0 : index
    %c1_123 = arith.constant 1 : index
    %c0_124 = arith.constant 0 : index
    %160 = vector.load %arg9[%c0_122, %c1_123, %c0_124] : memref<2x18x128xf32, #tpu.memory_space<vmem>>, vector<2x16x128xf32>
    tpu.vector_store %arg9[%c0_122, %c1_123, %c0_124], %152 {strides = array<i32>} : memref<2x18x128xf32, #tpu.memory_space<vmem>>, vector<2x16x128xf32>,
    %c0_125 = arith.constant 0 : index
    %c0_126 = arith.constant 0 : index
    %c0_127 = arith.constant 0 : index
    %161 = vector.load %arg9[%c0_125, %c0_126, %c0_127] : memref<2x18x128xf32, #tpu.memory_space<vmem>>, vector<2x18x128xf32>
    %162 = vector.extract_strided_slice %161 {offsets = [0, 0, 0], sizes = [2, 16, 128], strides = [1, 1, 1]} : vector<2x18x128xf32> to vector<2x16x128xf32>
    %163 = vector.shape_cast %162 : vector<2x16x128xf32> to vector<32x128xf32>
    %cst_128 = arith.constant dense<0.000000e+00> : vector<32x128xf32>
    %164 = tpu.matmul %163, %154, %cst_128 {dimension_numbers = #tpu.dot_dimension_numbers<[1], [0], [0], [1], [0, 0, 1, 1], [], []>} : vector<32x128xf32>, vector<128x128xf32>, vector<32x128xf32> -> vector<32x128xf32>
    %165 = vector.extract_strided_slice %161 {offsets = [0, 1, 0], sizes = [2, 16, 128], strides = [1, 1, 1]} : vector<2x18x128xf32> to vector<2x16x128xf32>
    %166 = vector.shape_cast %165 : vector<2x16x128xf32> to vector<32x128xf32>
    %cst_129 = arith.constant dense<0.000000e+00> : vector<32x128xf32>
    %167 = tpu.matmul %166, %156, %cst_129 {dimension_numbers = #tpu.dot_dimension_numbers<[1], [0], [0], [1], [0, 0, 1, 1], [], []>} : vector<32x128xf32>, vector<128x128xf32>, vector<32x128xf32> -> vector<32x128xf32>
    %168 = arith.addf %164, %167 : vector<32x128xf32>
    %169 = vector.extract_strided_slice %161 {offsets = [0, 2, 0], sizes = [2, 16, 128], strides = [1, 1, 1]} : vector<2x18x128xf32> to vector<2x16x128xf32>
    %170 = vector.shape_cast %169 : vector<2x16x128xf32> to vector<32x128xf32>
    %cst_130 = arith.constant dense<0.000000e+00> : vector<32x128xf32>
    %171 = tpu.matmul %170, %158, %cst_130 {dimension_numbers = #tpu.dot_dimension_numbers<[1], [0], [0], [1], [0, 0, 1, 1], [], []>} : vector<32x128xf32>, vector<128x128xf32>, vector<32x128xf32> -> vector<32x128xf32>
    %172 = arith.addf %168, %171 : vector<32x128xf32>
    %173 = vector.broadcast %159 : vector<1x128xf32> to vector<32x128xf32>
    %174 = arith.addf %172, %173 : vector<32x128xf32>
    %175 = math.tanh %174 : vector<32x128xf32>
    %c0_131 = arith.constant 0 : index
    %c0_132 = arith.constant 0 : index
    %176 = vector.load %arg8[%c0_131, %c0_132] : memref<32x128xf32, #tpu.memory_space<vmem>>, vector<32x128xf32>
    tpu.vector_store %arg8[%c0_131, %c0_132], %175 {strides = array<i32>} : memref<32x128xf32, #tpu.memory_space<vmem>>, vector<32x128xf32>,
    return
  }
}

</mosaic_0001>

<bundles_post_ra>
// kernel: decoder_forward.1
= control target key start
LH: loop header
LB: loop body
LE: loop exit
PB: predicated region body
PF: predicated region fallthrough
CT: control target
= control target key end

     0   :  { %13 = vsyncpa [#allocation4], 0  ;;  %s1318_s30 = smov [#allocation3]   ;;  %s1319_s10 = smov 128   ;;  %s1883_s0 = inlined_call_operand.vmem [shape: f32[2,16,128], index: 0, kind: input, shape index: {}]   ;;  %s1884_s1 = inlined_call_operand.hbm [shape: f32[3,3,128,128], index: 1, kind: input, shape index: {}]   ;;  %s1885_s2 = inlined_call_operand.vmem [shape: f32[3,1,128], index: 2, kind: input, shape index: {}]   ;;  %s1886_s3 = inlined_call_operand.vmem [shape: f32[3,2,128], index: 3, kind: input, shape index: {}]   ;;  %s1887_s4 = inlined_call_operand.vmem [shape: f32[3,2,128], index: 4, kind: input, shape index: {}]   ;;  %s1888_s5 = inlined_call_operand.vmem [shape: f32[3,128,128], index: 5, kind: input, shape index: {}]   ;;  %s1889_s6 = inlined_call_operand.vmem [shape: f32[1,128], index: 6, kind: input, shape index: {}]   ;;  %s1890_s7 = inlined_call_operand.vmem [shape: f32[128,128], index: 7, kind: input, shape index: {}]   ;;  %s1891_s8 = inlined_call_operand.vmem [shape: f32[32,128], index: 8, kind: output, shape index: {}]  }
   0x1   :  { %s20_s29 = sshll.u32 %s1884_s1, 4  ;;  %s22_s9 = sshll.u32 %s1318_s30, 4  ;;  %s21_s29 = int_to_ptr.hbm [resolvable:$true] %s20_s29  ;;  %s23_s9 = int_to_ptr.vmem [resolvable:$true] %s22_s9 }
   0x2   :  { %s1320_s11 = smov 8  }
   0x3   :  { %28 = dma.hbm_to_vmem [thread:$0]  %s21_s29, 18432, %s23_s9, [#allocation4], %s1319_s10, %s1319_s10, %s1320_s11  }
   0x4   :  { %1316 = dma.done.wait [#allocation4], 18432  }
   0x5   :  { %1317 = vsyncadd [#allocation4], 4294948864  ;;  %v1321_v0 = vmov 0.0   ;;  %v87_v1 = vld [vmem:[#allocation3 + $0xf8] sm:$0xff]  ;;  %v86_v2 = vld [vmem:[#allocation3 + $0xf0] sm:$0xff]  ;;  %vm122_vm0 = vcmask 1046528  }
   0x6   :  { %45 = vst [vmem:[#allocation2] sm:$0xff] %v1321_v0  ;;  %v104_v3 = vld [vmem:[#allocation3 + $0x178] sm:$0xff]  ;;  %137 = vmatpush.msra.mxu3 %v87_v1  ;;  %v103_v4 = vld [vmem:[#allocation3 + $0x170] sm:$0xff]  ;;  %v85_v5 = vld [vmem:[#allocation3 + $0xe8] sm:$0xff]  ;;  %vm195_vm1 = vcmask 1045504   ;;  %vm286_vm2 = vcmask 1041409  }
   0x7   :  { %46 = vst [vmem:[#allocation2 + $0x8] sm:$0xff] %v1321_v0  ;;  %210 = vmatpush.msra.mxu2 %v104_v3  ;;  %v70_v6 = vld [vmem:[#allocation3 + $0x78] sm:$0xff]  ;;  %v102_v7 = vld [vmem:[#allocation3 + $0x168] sm:$0xff]  ;;  %v69_v8 = vld [vmem:[#allocation3 + $0x70] sm:$0xff]  ;;  %vm291_vm3 = vcmask 1043459   ;;  %vm294_vm4 = vcmask 1041408  }
   0x8   :  { %47 = vst [vmem:[#allocation2 + $0x10] sm:$0x3] %v1321_v0  ;;  %138 = vmatpush.msra.mxu3 %v86_v2  ;;  %v84_v9 = vld [vmem:[#allocation3 + $0xe0] sm:$0xff]  ;;  %166 = vmatpush.msra.mxu1 %v70_v6  ;;  %v68_v11 = vld [vmem:[#allocation3 + $0x68] sm:$0xff]  ;;  %v83_v12 = vld [vmem:[#allocation3 + $0xd8] sm:$0xff] }
   0x9   :  { %48 = vst [vmem:[#allocation2 + $0x18] sm:$0xff] %v1321_v0  ;;  %211 = vmatpush.msra.mxu2 %v103_v4  ;;  %v101_v10 = vld [vmem:[#allocation3 + $0x160] sm:$0xff]  ;;  %v100_v13 = vld [vmem:[#allocation3 + $0x158] sm:$0xff]  ;;  %v82_v15 = vld [vmem:[#allocation3 + $0xd0] sm:$0xff] }
   0xa   :  { %49 = vst [vmem:[#allocation2 + $0x20] sm:$0xff] %v1321_v0  ;;  %139 = vmatpush.msra.mxu3 %v85_v5  ;;  %167 = vmatpush.msra.mxu1 %v69_v8  ;;  %v67_v14 = vld [vmem:[#allocation3 + $0x60] sm:$0xff]  ;;  %v99_v16 = vld [vmem:[#allocation3 + $0x150] sm:$0xff]  ;;  %v66_v17 = vld [vmem:[#allocation3 + $0x58] sm:$0xff] }
   0xb   :  { %50 = vst [vmem:[#allocation2 + $0x28] sm:$0x3] %v1321_v0  ;;  %212 = vmatpush.msra.mxu2 %v102_v7  ;;  %v81_v18 = vld [vmem:[#allocation3 + $0xc8] sm:$0xff]  ;;  %v65_v20 = vld [vmem:[#allocation3 + $0x50] sm:$0xff]  ;;  %v80_v21 = vld [vmem:[#allocation3 + $0xc0] sm:$0xff] }
   0xc   :  { %140 = vmatpush.msra.mxu3 %v84_v9  ;;  %168 = vmatpush.msra.mxu1 %v68_v11  ;;  %v98_v19 = vld [vmem:[#allocation3 + $0x148] sm:$0xff]  ;;  %v97_v22 = vld [vmem:[#allocation3 + $0x140] sm:$0xff]  ;;  %v79_v24 = vld [vmem:[#allocation3 + $0xb8] sm:$0xff] }
   0xd   :  { %213 = vmatpush.msra.mxu2 %v101_v10  ;;  %v64_v23 = vld [vmem:[#allocation3 + $0x48] sm:$0xff]  ;;  %v96_v25 = vld [vmem:[#allocation3 + $0x138] sm:$0xff]  ;;  %v51_v26 = vld [vmem:[%s1883_s0] sm:$0xff] }
   0xe   :  { %141 = vmatpush.msra.mxu3 %v83_v12  ;;  %169 = vmatpush.msra.mxu1 %v67_v14  ;;  %v78_v27 = vld [vmem:[#allocation3 + $0xb0] sm:$0xff]  ;;  %v63_v28 = vld [vmem:[#allocation3 + $0x40] sm:$0xff]  ;;  %v52_v29 = vld [vmem:[%s1883_s0 + $0x8] sm:$0xff]  ;;  %106 = vst [vmem:[#allocation2 + $0x1] sm:$0xff] %v51_v26 }
   0xf   :  { %214 = vmatpush.msra.mxu2 %v100_v13  ;;  %v77_v30 = vld [vmem:[#allocation3 + $0xa8] sm:$0xff]  ;;  %v95_v31 = vld [vmem:[#allocation3 + $0x130] sm:$0xff]  ;;  %v62_v32 = vld [vmem:[#allocation3 + $0x38] sm:$0xff]  ;;  %107 = vst [vmem:[#allocation2 + $0x9] sm:$0xff] %v52_v29 }
  0x10   :  { %142 = vmatpush.msra.mxu3 %v82_v15  ;;  %170 = vmatpush.msra.mxu1 %v66_v17  ;;  %v53_v33 = vld [vmem:[%s1883_s0 + $0x10] sm:$0xff]  ;;  %v54_v34 = vld [vmem:[%s1883_s0 + $0x18] sm:$0xff]  ;;  %v61_v36 = vld [vmem:[#allocation3 + $0x30] sm:$0xff] }
  0x11   :  { %215 = vmatpush.msra.mxu2 %v99_v16  ;;  %108 = vst [vmem:[#allocation2 + $0x19] sm:$0xff] %v53_v33  ;;  %v94_v35 = vld [vmem:[#allocation3 + $0x128] sm:$0xff]  ;;  %v76_v37 = vld [vmem:[#allocation3 + $0xa0] sm:$0xff]  ;;  %v75_v40 = vld [vmem:[#allocation3 + $0x98] sm:$0xff] }
  0x12   :  { %143 = vmatpush.msra.mxu3 %v81_v18  ;;  %171 = vmatpush.msra.mxu1 %v65_v20  ;;  %109 = vst [vmem:[#allocation2 + $0x21] sm:$0xff] %v54_v34  ;;  %v93_v38 = vld [vmem:[#allocation3 + $0x120] sm:$0xff]  ;;  %v60_v39 = vld [vmem:[#allocation3 + $0x28] sm:$0xff]  ;;  %v92_v41 = vld [vmem:[#allocation3 + $0x118] sm:$0xff] }
  0x13   :  { %216 = vmatpush.msra.mxu2 %v98_v19  ;;  %v59_v43 = vld [vmem:[#allocation3 + $0x20] sm:$0xff]  ;;  %v74_v45 = vld [vmem:[#allocation3 + $0x90] sm:$0xff]  ;;  %v58_v47 = vld [vmem:[#allocation3 + $0x18] sm:$0xff] }
  0x14   :  { %144 = vmatpush.msra.mxu3 %v80_v21  ;;  %172 = vmatpush.msra.mxu1 %v64_v23  ;;  %v91_v46 = vld [vmem:[#allocation3 + $0x110] sm:$0xff]  ;;  %v73_v52 = vld [vmem:[#allocation3 + $0x88] sm:$0xff]  ;;  %v72_v55 = vld [vmem:[#allocation3 + $0x80] sm:$0xff] }
  0x15   :  { %217 = vmatpush.msra.mxu2 %v97_v22  ;;  %v110_v42 = vld [vmem:[#allocation2] sm:$0xff]  ;;  %v90_v53 = vld [vmem:[#allocation3 + $0x108] sm:$0xff]  ;;  %v89_v56 = vld [vmem:[#allocation3 + $0x100] sm:$0xff] }
  0x16   :  { %145 = vmatpush.msra.mxu3 %v79_v24  ;;  %173 = vmatpush.msra.mxu1 %v63_v28  ;;  %v111_v44 = vld [vmem:[#allocation2 + $0x8] sm:$0xff]  ;;  %v123_v48 = vrot.slane %v110_v42, 1  ;;  %v196_v50 = vrot.slane %v110_v42, 2  ;;  %v57_v54 = vld [vmem:[#allocation3 + $0x10] sm:$0xff]  ;;  %v56_v59 = vld [vmem:[#allocation3 + $0x8] sm:$0xff] }
  0x17   :  { %218 = vmatpush.msra.mxu2 %v96_v25  ;;  %v124_v49 = vrot.slane %v111_v44, 1  ;;  %v197_v51 = vrot.slane %v111_v44, 2  ;;  %v112_v60 = vld [vmem:[#allocation2 + $0x10] sm:$0x3]  ;;  %v311_v15 = vld [vmem:[%s1890_s7 + $0x78] sm:$0xff]  ;;  %v309_v17 = vld [vmem:[%s1890_s7 + $0x68] sm:$0xff] }
  0x18   :  { %146 = vmatpush.msra.mxu3 %v78_v27  ;;  %174 = vmatpush.msra.mxu1 %v62_v32  ;;  %v55_v61 = vld [vmem:[#allocation3] sm:$0xff]  ;;  %v126_v62 = vrot.slane %v112_v60, 1  ;;  %v199_v63 = vrot.slane %v112_v60, 2  ;;  %v113_v2 = vld [vmem:[#allocation2 + $0x18] sm:$0xff]  ;;  %v308_v18 = vld [vmem:[%s1890_s7 + $0x60] sm:$0xff] }
  0x19   :  { %219 = vmatpush.msra.mxu2 %v95_v31  ;;  %v125_v57 = vsel %vm122_vm0, %v123_v48, %v124_v49  ;;  %v198_v58 = vsel %vm195_vm1, %v196_v50, %v197_v51  ;;  %v114_v3 = vld [vmem:[#allocation2 + $0x20] sm:$0xff]  ;;  %v128_v4 = vrot.slane %v113_v2, 1  ;;  %v201_v6 = vrot.slane %v113_v2, 2  ;;  %v115_v10 = vld [vmem:[#allocation2 + $0x28] sm:$0x3]  ;;  %v310_v16 = vld [vmem:[%s1890_s7 + $0x70] sm:$0xff] }
  0x1a   :  { %147 = vmatpush.msra.mxu3 %v77_v30  ;;  %175 = vmatpush.msra.mxu1 %v61_v36  ;;  %v127_v0 = vsel %vm122_vm0, %v124_v49, %v126_v62  ;;  %v200_v1 = vsel %vm195_vm1, %v197_v51, %v199_v63  ;;  %v129_v5 = vrot.slane %v114_v3, 1  ;;  %v202_v7 = vrot.slane %v114_v3, 2  ;;  %v307_v19 = vld [vmem:[%s1890_s7 + $0x58] sm:$0xff]  ;;  %v306_v20 = vld [vmem:[%s1890_s7 + $0x50] sm:$0xff]  ;;  %v305_v21 = vld [vmem:[%s1890_s7 + $0x48] sm:$0xff] }
  0x1b   :  { %220 = vmatpush.msra.mxu2 %v94_v35  ;;  %v131_v11 = vrot.slane %v115_v10, 1  ;;  %v204_v12 = vrot.slane %v115_v10, 2  ;;  %v304_v23 = vld [vmem:[%s1890_s7 + $0x40] sm:$0xff]  ;;  %v303_v26 = vld [vmem:[%s1890_s7 + $0x38] sm:$0xff]  ;;  %v302_v27 = vld [vmem:[%s1890_s7 + $0x30] sm:$0xff] }
  0x1c   :  { %148 = vmatpush.msra.mxu3 %v76_v37  ;;  %176 = vmatpush.msra.mxu1 %v60_v39  ;;  %v130_v8 = vsel %vm122_vm0, %v128_v4, %v129_v5  ;;  %v203_v9 = vsel %vm195_vm1, %v201_v6, %v202_v7  ;;  %v1423_v28 = vld [vmem:[%s1890_s7 + $0x28] sm:$0xff]  ;;  %v1428_v29 = vld [vmem:[%s1890_s7 + $0x20] sm:$0xff]  ;;  %v1434_v32 = vld [vmem:[%s1890_s7 + $0x18] sm:$0xff] }
  0x1d   :  { %221 = vmatpush.msra.mxu2 %v93_v38  ;;  %v132_v13 = vsel %vm122_vm0, %v129_v5, %v131_v11  ;;  %v205_v14 = vsel %vm195_vm1, %v202_v7, %v204_v12  ;;  %v1440_v36 = vld [vmem:[%s1890_s7 + $0x10] sm:$0xff]  ;;  %v1274_v38 = vld [vmem:[%s1885_s2] ss:$0 sm:$0xff] }
  0x1e   :  { %149 = vmatpush.msra.mxu3 %v75_v40  ;;  %177 = vmatpush.msra.mxu1 %v59_v43  ;;  %v1449_v40 = vld [vmem:[%s1890_s7 + $0x8] sm:$0xff] }
  0x1f   :  { %222 = vmatpush.msra.mxu2 %v92_v41 }
  0x20   :  { %150 = vmatpush.msra.mxu3 %v74_v45  ;;  %178 = vmatpush.msra.mxu1 %v58_v47 }
  0x21   :  { %223 = vmatpush.msra.mxu2 %v91_v46 }
  0x22   :  { %151 = vmatpush.msra.mxu3 %v73_v52  ;;  %179 = vmatpush.msra.mxu1 %v57_v54 }
  0x23   :  { %224 = vmatpush.msra.mxu2 %v90_v53 }
  0x24   :  { %152 = vmatpush.msra.mxu3 %v72_v55  ;;  %180 = vmatpush.msra.mxu1 %v56_v59 }
  0x25   :  { %225 = vmatpush.msra.mxu2 %v89_v56  ;;  %153 = vmatmul.f32.vlgmr.msra.gmra.mxu3 %v125_v57 }
  0x26   :  { %226 = vmatmul.f32.vlgmr.msra.gmra.mxu2 %v198_v58  ;;  %181 = vmatpush.msra.mxu1 %v55_v61 }
  0x27   :  { %182 = vmatmul.f32.vlgmr.msra.gmra.mxu1 %v110_v42  ;;  %312 = vmatpush.msrb.mxu3 %v311_v15  ;;  %v1457_v42 = vld [vmem:[%s1890_s7] sm:$0xff] }
  0x29   :  { %313 = vmatpush.msrb.mxu3 %v310_v16 }
  0x2b   :  { %314 = vmatpush.msrb.mxu3 %v309_v17 }
  0x2d   :  { %156 = vmatmul.f32.gmra.mxu3 %v127_v0 }
  0x2e   :  { %229 = vmatmul.f32.gmra.mxu2 %v200_v1  ;;  %315 = vmatpush.msrb.mxu3 %v308_v18 }
  0x2f   :  { %185 = vmatmul.f32.gmra.mxu1 %v111_v44 }
  0x30   :  { %316 = vmatpush.msrb.mxu3 %v307_v19 }
  0x32   :  { %317 = vmatpush.msrb.mxu3 %v306_v20 }
  0x34   :  { %318 = vmatpush.msrb.mxu3 %v305_v21 }
  0x35   :  { %159 = vmatmul.f32.gmra.mxu3 %v130_v8 }
  0x36   :  { %232 = vmatmul.f32.gmra.mxu2 %v203_v9  ;;  %319 = vmatpush.msrb.mxu3 %v304_v23 }
  0x37   :  { %188 = vmatmul.f32.gmra.mxu1 %v113_v2 }
  0x38   :  { %320 = vmatpush.msrb.mxu3 %v303_v26 }
  0x3a   :  { %321 = vmatpush.msrb.mxu3 %v302_v27 }
  0x3c   :  { %322 = vmatpush.msrb.mxu3 %v1423_v28 }
  0x3d   :  { %162 = vmatmul.f32.gmra.mxu3 %v132_v13 }
  0x3e   :  { %235 = vmatmul.f32.gmra.mxu2 %v205_v14  ;;  %323 = vmatpush.msrb.mxu3 %v1428_v29 }
  0x3f   :  { %191 = vmatmul.f32.gmra.mxu1 %v114_v3 }
  0x40   :  { %324 = vmatpush.msrb.mxu3 %v1434_v32 }
  0x42   :  { %325 = vmatpush.msrb.mxu3 %v1440_v36 }
  0x44   :  { %326 = vmatpush.msrb.mxu3 %v1449_v40 }
  0x46   :  { %327 = vmatpush.msrb.mxu3 %v1457_v42 }
  0x48   :  { %630 = vmatpush.msra.mxu3 %v311_v15 }
  0x4a   :  { %631 = vmatpush.msra.mxu3 %v310_v16 }
  0x4c   :  { %632 = vmatpush.msra.mxu3 %v309_v17 }
  0x4e   :  { %633 = vmatpush.msra.mxu3 %v308_v18 }
  0x50   :  { %634 = vmatpush.msra.mxu3 %v307_v19 }
  0x52   :  { %635 = vmatpush.msra.mxu3 %v306_v20 }
  0x54   :  { %636 = vmatpush.msra.mxu3 %v305_v21 }
  0x56   :  { %637 = vmatpush.msra.mxu3 %v304_v23 }
  0x58   :  { %638 = vmatpush.msra.mxu3 %v303_v26 }
  0x5a   :  { %639 = vmatpush.msra.mxu3 %v302_v27  ;;  %v390_v27 = vld [vmem:[#allocation3 + $0x1f8] sm:$0xff] }
  0x5b   :  { %486 = vmatpush.msrb.mxu1 %v390_v27 }
  0x5c   :  { %640 = vmatpush.msra.mxu3 %v1423_v28  ;;  %v389_v28 = vld [vmem:[#allocation3 + $0x1f0] sm:$0xff] }
  0x5d   :  { %487 = vmatpush.msrb.mxu1 %v389_v28 }
  0x5e   :  { %641 = vmatpush.msra.mxu3 %v1428_v29  ;;  %v424_v29 = vld [vmem:[#allocation3 + $0x2f8] sm:$0xff] }
  0x5f   :  { %529 = vmatpush.msrb.mxu2 %v424_v29 }
  0x60   :  { %642 = vmatpush.msra.mxu3 %v1434_v32  ;;  %v423_v32 = vld [vmem:[#allocation3 + $0x2f0] sm:$0xff] }
  0x61   :  { %530 = vmatpush.msrb.mxu2 %v423_v32 }
  0x62   :  { %643 = vmatpush.msra.mxu3 %v1440_v36  ;;  %v405_v36 = vld [vmem:[#allocation3 + $0x268] sm:$0xff] }
  0x64   :  { %644 = vmatpush.msra.mxu3 %v1449_v40  ;;  %v385_v40 = vld [vmem:[#allocation3 + $0x1d0] sm:$0xff] }
  0x66   :  { %645 = vmatpush.msra.mxu3 %v1457_v42  ;;  %v420_v42 = vld [vmem:[#allocation3 + $0x2d8] sm:$0xff] }
  0xa4   :  { %v183_v22 = vpop.f32.mrf.mxu1 }
  0xa8   :  { %v154_v24 = vpop.f32.mrf.mxu3 }
  0xa9   :  { %v227_v25 = vpop.f32.mrf.mxu2  ;;  %v184_v31 = vadd.f32 %v183_v22, %v154_v24 }
  0xab   :  { %v239_v37 = vadd.f32 %v227_v25, %v184_v31  ;;  %v388_v31 = vld [vmem:[#allocation3 + $0x1e8] sm:$0xff] }
  0xac   :  { %v186_v30 = vpop.f32.mrf.mxu1  ;;  %488 = vmatpush.msrb.mxu1 %v388_v31 }
  0xad   :  { %v1460_v44 = vadd.f32 %v1274_v38, %v239_v37  ;;  %v386_v37 = vld [vmem:[#allocation3 + $0x1d8] sm:$0xff] }
  0xaf   :  { %v266_v48 = vmul.f32 %v1460_v44, %v1460_v44 }
  0xb0   :  { %v157_v33 = vpop.f32.mrf.mxu3 }
  0xb1   :  { %v230_v34 = vpop.f32.mrf.mxu2  ;;  %v187_v35 = vadd.f32 %v186_v30, %v157_v33  ;;  %v407_v30 = vld [vmem:[#allocation3 + $0x278] sm:$0xff]  ;;  %v406_v33 = vld [vmem:[#allocation3 + $0x270] sm:$0xff] }
  0xb2   :  { %457 = vmatpush.msra.mxu0 %v407_v30  ;;  %v251_v30 = vld [vmem:[%s1887_s4] sm:$0x3] }
  0xb3   :  { %v240_v39 = vadd.f32 %v230_v34, %v187_v35  ;;  %v387_v34 = vld [vmem:[#allocation3 + $0x1e0] sm:$0xff]  ;;  %v422_v35 = vld [vmem:[#allocation3 + $0x2e8] sm:$0xff] }
  0xb4   :  { %v189_v43 = vpop.f32.mrf.mxu1  ;;  %458 = vmatpush.msra.mxu0 %v406_v33  ;;  %489 = vmatpush.msrb.mxu1 %v387_v34 }
  0xb5   :  { %v1452_v41 = vadd.f32 %v1274_v38, %v240_v39  ;;  %531 = vmatpush.msrb.mxu2 %v422_v35  ;;  %v404_v39 = vld [vmem:[#allocation3 + $0x260] sm:$0xff] }
  0xb6   :  { %459 = vmatpush.msra.mxu0 %v405_v36  ;;  %490 = vmatpush.msrb.mxu1 %v386_v37 }
  0xb7   :  { %v267_v47 = vmul.f32 %v1452_v41, %v1452_v41  ;;  %v252_v50 = vadd.f32 %v1452_v41, %v1460_v44 }
  0xb8   :  { %v160_v45 = vpop.f32.mrf.mxu3  ;;  %460 = vmatpush.msra.mxu0 %v404_v39  ;;  %491 = vmatpush.msrb.mxu1 %v385_v40 }
  0xb9   :  { %v233_v46 = vpop.f32.mrf.mxu2  ;;  %v190_v49 = vadd.f32 %v189_v43, %v160_v45  ;;  %v270_v51 = vadd.f32 %v267_v47, %v266_v48  ;;  %v253_v56 = vrot.slane %v252_v50, 4  ;;  %v403_v43 = vld [vmem:[#allocation3 + $0x258] sm:$0xff]  ;;  %v384_v45 = vld [vmem:[#allocation3 + $0x1c8] sm:$0xff]  ;;  %v402_v47 = vld [vmem:[#allocation3 + $0x250] sm:$0xff] }
  0xba   :  { %461 = vmatpush.msra.mxu0 %v403_v43  ;;  %492 = vmatpush.msrb.mxu1 %v384_v45  ;;  %v383_v48 = vld [vmem:[#allocation3 + $0x1c0] sm:$0xff] }
  0xbb   :  { %v241_v53 = vadd.f32 %v233_v46, %v190_v49  ;;  %v271_v57 = vrot.slane %v270_v51, 4  ;;  %v254_v61 = vadd.f32 %v253_v56, %v252_v50  ;;  %v419_v46 = vld [vmem:[#allocation3 + $0x2d0] sm:$0xff]  ;;  %v418_v49 = vld [vmem:[#allocation3 + $0x2c8] sm:$0xff] }
  0xbc   :  { %v192_v52 = vpop.f32.mrf.mxu1  ;;  %462 = vmatpush.msra.mxu0 %v402_v47  ;;  %493 = vmatpush.msrb.mxu1 %v383_v48  ;;  %v401_v50 = vld [vmem:[#allocation3 + $0x248] sm:$0xff]  ;;  %v381_v56 = vld [vmem:[#allocation3 + $0x1b0] sm:$0xff] }
  0xbd   :  { %v1469_v59 = vadd.f32 %v1274_v38, %v241_v53  ;;  %v272_v62 = vadd.f32 %v271_v57, %v270_v51  ;;  %v255_v3 = vrot.slane %v254_v61, 2 }
  0xbe   :  { %463 = vmatpush.msra.mxu0 %v401_v50 }
  0xbf   :  { %v268_v0 = vmul.f32 %v1469_v59, %v1469_v59  ;;  %v273_v6 = vrot.slane %v272_v62, 2  ;;  %v256_v11 = vadd.f32 %v255_v3, %v254_v61  ;;  %v380_v61 = vld [vmem:[#allocation3 + $0x1a8] sm:$0xff] }
  0xc0   :  { %v163_v54 = vpop.f32.mrf.mxu3 }
  0xc1   :  { %v236_v55 = vpop.f32.mrf.mxu2  ;;  %v193_v58 = vadd.f32 %v192_v52, %v163_v54  ;;  %v274_v12 = vadd.f32 %v273_v6, %v272_v62  ;;  %v257_v15 = vrot.slane %v256_v11, 1  ;;  %v382_v52 = vld [vmem:[#allocation3 + $0x1b8] sm:$0xff]  ;;  %v417_v54 = vld [vmem:[#allocation3 + $0x2c0] sm:$0xff] }
  0xc2   :  { %494 = vmatpush.msrb.mxu1 %v382_v52  ;;  %v378_v6 = vld [vmem:[#allocation3 + $0x198] sm:$0xff] }
  0xc3   :  { %v242_v60 = vadd.f32 %v236_v55, %v193_v58  ;;  %v275_v17 = vrot.slane %v274_v12, 1  ;;  %v258_v21 = vadd.f32 %v257_v15, %v256_v11  ;;  %v400_v55 = vld [vmem:[#allocation3 + $0x240] sm:$0xff]  ;;  %v416_v58 = vld [vmem:[#allocation3 + $0x2b8] sm:$0xff] }
  0xc4   :  { %464 = vmatpush.msra.mxu0 %v400_v55  ;;  %495 = vmatpush.msrb.mxu1 %v381_v56  ;;  %v395_v11 = vld [vmem:[#allocation3 + $0x218] sm:$0xff]  ;;  %v375_v15 = vld [vmem:[#allocation3 + $0x180] sm:$0xff] }
  0xc5   :  { %v1471_v63 = vadd.f32 %v1274_v38, %v242_v60  ;;  %v276_v22 = vadd.f32 %v275_v17, %v274_v12  ;;  %v421_v38 = vld [vmem:[#allocation3 + $0x2e0] sm:$0xff]  ;;  %v399_v60 = vld [vmem:[#allocation3 + $0x238] sm:$0xff]  ;;  %v376_v12 = vld [vmem:[#allocation3 + $0x188] sm:$0xff] }
  0xc6   :  { %532 = vmatpush.msrb.mxu2 %v421_v38  ;;  %465 = vmatpush.msra.mxu0 %v399_v60  ;;  %v393_v17 = vld [vmem:[#allocation3 + $0x208] sm:$0xff] }
  0xc7   :  { %v259_v1 = vadd.f32 %v1471_v63, %v1469_v59  ;;  %v269_v2 = vmul.f32 %v1471_v63, %v1471_v63  ;;  %496 = vmatpush.msrb.mxu1 %v380_v61 }
  0xc8   :  { %533 = vmatpush.msrb.mxu2 %v420_v42 }
  0xc9   :  { %v260_v4 = vrot.slane %v259_v1, 4  ;;  %v277_v5 = vadd.f32 %v269_v2, %v268_v0  ;;  %v415_v0 = vld [vmem:[#allocation3 + $0x2b0] sm:$0xff]  ;;  %v379_v2 = vld [vmem:[#allocation3 + $0x1a0] sm:$0xff] }
  0xca   :  { %534 = vmatpush.msrb.mxu2 %v419_v46  ;;  %497 = vmatpush.msrb.mxu1 %v379_v2 }
  0xcb   :  { %v261_v7 = vadd.f32 %v260_v4, %v259_v1  ;;  %v278_v8 = vrot.slane %v277_v5, 4  ;;  %v398_v1 = vld [vmem:[#allocation3 + $0x230] sm:$0xff]  ;;  %v414_v4 = vld [vmem:[#allocation3 + $0x2a8] sm:$0xff] }
  0xcc   :  { %535 = vmatpush.msrb.mxu2 %v418_v49  ;;  %466 = vmatpush.msra.mxu0 %v398_v1 }
  0xcd   :  { %v262_v9 = vrot.slane %v261_v7, 2  ;;  %v279_v10 = vadd.f32 %v278_v8, %v277_v5  ;;  %v397_v5 = vld [vmem:[#allocation3 + $0x228] sm:$0xff]  ;;  %498 = vmatpush.msrb.mxu1 %v378_v6  ;;  %v396_v8 = vld [vmem:[#allocation3 + $0x220] sm:$0xff] }
  0xce   :  { %536 = vmatpush.msrb.mxu2 %v417_v54  ;;  %467 = vmatpush.msra.mxu0 %v397_v5 }
  0xcf   :  { %v263_v13 = vadd.f32 %v262_v9, %v261_v7  ;;  %v280_v14 = vrot.slane %v279_v10, 2  ;;  %v413_v7 = vld [vmem:[#allocation3 + $0x2a0] sm:$0xff]  ;;  %v377_v9 = vld [vmem:[#allocation3 + $0x190] sm:$0xff] }
  0xd0   :  { %537 = vmatpush.msrb.mxu2 %v416_v58  ;;  %468 = vmatpush.msra.mxu0 %v396_v8 }
  0xd1   :  { %v264_v16 = vrot.slane %v263_v13, 1  ;;  %v281_v18 = vadd.f32 %v280_v14, %v279_v10  ;;  %v412_v10 = vld [vmem:[#allocation3 + $0x298] sm:$0xff]  ;;  %499 = vmatpush.msrb.mxu1 %v377_v9  ;;  %v394_v14 = vld [vmem:[#allocation3 + $0x210] sm:$0xff] }
  0xd2   :  { %538 = vmatpush.msrb.mxu2 %v415_v0  ;;  %469 = vmatpush.msra.mxu0 %v395_v11 }
  0xd3   :  { %v265_v19 = vadd.f32 %v264_v16, %v263_v13  ;;  %v282_v20 = vrot.slane %v281_v18, 1  ;;  %v411_v13 = vld [vmem:[#allocation3 + $0x290] sm:$0xff]  ;;  %500 = vmatpush.msrb.mxu1 %v376_v12  ;;  %v410_v16 = vld [vmem:[#allocation3 + $0x288] sm:$0xff] }
  0xd4   :  { %539 = vmatpush.msrb.mxu2 %v414_v4  ;;  %470 = vmatpush.msra.mxu0 %v394_v14 }
  0xd5   :  { %v283_v23 = vadd.f32 %v282_v20, %v281_v18  ;;  %v287_v24 = vsel %vm286_vm2, %v265_v19, %v258_v21  ;;  %501 = vmatpush.msrb.mxu1 %v375_v15  ;;  %v409_v19 = vld [vmem:[#allocation3 + $0x280] sm:$0xff] }
  0xd6   :  { %540 = vmatpush.msrb.mxu2 %v413_v7  ;;  %v392_v20 = vld [vmem:[#allocation3 + $0x200] sm:$0xff]  ;;  %471 = vmatpush.msra.mxu0 %v393_v17 }
  0xd7   :  { %v292_v25 = vsel %vm291_vm3, %v283_v23, %v276_v22 }
  0xd8   :  { %v295_v26 = vsel %vm294_vm4, %v287_v24, %v292_v25  ;;  %541 = vmatpush.msrb.mxu2 %v412_v10  ;;  %472 = vmatpush.msra.mxu0 %v392_v20 }
  0xd9   :  { %328 = vmatmul.f32.vlgmr.msrb.gmra.mxu3 %v295_v26  ;;  %v250_v26 = vld [vmem:[%s1886_s3] sm:$0x3] }
  0xda   :  { %542 = vmatpush.msrb.mxu2 %v411_v13 }
  0xdc   :  { %543 = vmatpush.msrb.mxu2 %v410_v16 }
  0xde   :  { %544 = vmatpush.msrb.mxu2 %v409_v19 }
 0x15c   :  { %v1488_v51 = vpop.f32.mrf.mxu3 }
 0x15d   :  { %v332_v53 = vmul.f32 %v1488_v51, %v1488_v51 }
 0x15f   :  { %v334_v57 = vrot.slane %v332_v53, 6 }
 0x161   :  { %v336_v62 = vsub.f32 %v1488_v51, %v334_v57 }
 0x163   :  { %v337_v3 = vadd.f32 1e-05, %v336_v62 }
 0x165   :  { %1278 = vrsqrt.f32 %v337_v3  ;;  %vm344_vm6 = vweird.f32 %v337_v3 }
 0x16b   :  { %v1279_v18 = vpop.eup %1278 }
 0x16c   :  { %v339_v21 = vmul.f32 %v1279_v18, %v337_v3  ;;  %vm345_vm5 = vweird.f32 %v1279_v18 }
 0x16d   :  { %vm346_vm7 = vmor %vm344_vm6, %vm345_vm5 }
 0x16e   :  { %v340_v22 = vmul.f32 %v1279_v18, %v339_v21 }
 0x170   :  { %v341_v23 = vmul.f32 0.5, %v340_v22 }
 0x172   :  { %v342_v24 = vsub.f32 1.5, %v341_v23 }
 0x174   :  { %v343_v25 = vmul.f32 %v1279_v18, %v342_v24 }
 0x176   :  { %v347_v27 = vsel %vm346_vm7, %v1279_v18, %v343_v25  ;;  %v1275_v18 = vld [vmem:[%s1885_s2 + $0x1] ss:$0 sm:$0xff] }
 0x177   :  { %v349_v28 = vrot.slane %v347_v27, 2 }
 0x179   :  { %v351_v29 = vmul.f32 %v349_v28, %v250_v26 }
 0x17b   :  { %v352_v31 = vmul.f32 %v351_v29, %v1488_v51  ;;  %v355_v32 = vrot.slane %v351_v29, 1  ;;  %v356_v33 = vperm.slane %v351_v29, 0 }
 0x17d   :  { %v353_v34 = vsub.f32 %v251_v30, %v352_v31  ;;  %v357_v35 = vperm.slane %v355_v32, 0  ;;  %v360_v36 = vmul.f32 %v356_v33, %v1460_v44  ;;  %v361_v37 = vmul.f32 %v356_v33, %v1452_v41 }
 0x17f   :  { %v365_v38 = vrot.slane %v353_v34, 1  ;;  %v366_v39 = vperm.slane %v353_v34, 0  ;;  %v362_v40 = vmul.f32 %v357_v35, %v1469_v59  ;;  %v363_v42 = vmul.f32 %v357_v35, %v1471_v63 }
 0x181   :  { %v367_v43 = vperm.slane %v365_v38, 0  ;;  %v370_v45 = vadd.f32 %v366_v39, %v360_v36  ;;  %v371_v46 = vadd.f32 %v366_v39, %v361_v37 }
 0x183   :  { %v372_v47 = vadd.f32 %v367_v43, %v362_v40  ;;  %v373_v48 = vadd.f32 %v367_v43, %v363_v42  ;;  %427 = vst [vmem:[#allocation2 + $0x1] sm:$0xff] %v370_v45 }
 0x184   :  { %428 = vst [vmem:[#allocation2 + $0x9] sm:$0xff] %v371_v46 }
 0x185   :  { %429 = vst [vmem:[#allocation2 + $0x19] sm:$0xff] %v372_v47 }
 0x186   :  { %430 = vst [vmem:[#allocation2 + $0x21] sm:$0xff] %v373_v48 }
 0x18a   :  { %v431_v49 = vld [vmem:[#allocation2] sm:$0xff] }
 0x18b   :  { %502 = vmatmul.f32.vlgmr.msrb.gmra.mxu1 %v431_v49  ;;  %v432_v44 = vld [vmem:[#allocation2 + $0x8] sm:$0xff]  ;;  %v443_v50 = vrot.slane %v431_v49, 1  ;;  %v515_v41 = vrot.slane %v431_v49, 2  ;;  %v433_v53 = vld [vmem:[#allocation2 + $0x10] sm:$0x3] }
 0x18c   :  { %v444_v51 = vrot.slane %v432_v44, 1  ;;  %v516_v52 = vrot.slane %v432_v44, 2  ;;  %v446_v54 = vrot.slane %v433_v53, 1  ;;  %v518_v55 = vrot.slane %v433_v53, 2  ;;  %v434_v58 = vld [vmem:[#allocation2 + $0x18] sm:$0xff] }
 0x18d   :  { %v435_v60 = vld [vmem:[#allocation2 + $0x20] sm:$0xff]  ;;  %v448_v61 = vrot.slane %v434_v58, 1  ;;  %v520_v0 = vrot.slane %v434_v58, 2  ;;  %v436_v4 = vld [vmem:[#allocation2 + $0x28] sm:$0x3] }
 0x18e   :  { %v445_v59 = vsel %vm122_vm0, %v443_v50, %v444_v51  ;;  %v517_v63 = vsel %vm195_vm1, %v515_v41, %v516_v52  ;;  %v447_v56 = vsel %vm122_vm0, %v444_v51, %v446_v54  ;;  %v519_v57 = vsel %vm195_vm1, %v516_v52, %v518_v55 }
 0x18f   :  { %473 = vmatmul.f32.vlgmr.msra.gmra.mxu0 %v445_v59  ;;  %545 = vmatmul.f32.vlgmr.msrb.gmra.mxu2 %v517_v63  ;;  %v449_v62 = vrot.slane %v435_v60, 1  ;;  %v521_v1 = vrot.slane %v435_v60, 2  ;;  %v451_v5 = vrot.slane %v436_v4, 1  ;;  %v523_v6 = vrot.slane %v436_v4, 2 }
 0x191   :  { %v450_v2 = vsel %vm122_vm0, %v448_v61, %v449_v62  ;;  %v522_v3 = vsel %vm195_vm1, %v520_v0, %v521_v1  ;;  %v452_v7 = vsel %vm122_vm0, %v449_v62, %v451_v5  ;;  %v524_v8 = vsel %vm195_vm1, %v521_v1, %v523_v6  ;;  %v708_v5 = vld [vmem:[#allocation3 + $0x378] sm:$0xff]  ;;  %v707_v6 = vld [vmem:[#allocation3 + $0x370] sm:$0xff] }
 0x192   :  { %804 = vmatpush.msra.mxu1 %v708_v5 }
 0x193   :  { %505 = vmatmul.f32.gmra.mxu1 %v432_v44 }
 0x194   :  { %805 = vmatpush.msra.mxu1 %v707_v6 }
 0x197   :  { %476 = vmatmul.f32.gmra.mxu0 %v447_v56  ;;  %548 = vmatmul.f32.gmra.mxu2 %v519_v57 }
 0x19b   :  { %508 = vmatmul.f32.gmra.mxu1 %v434_v58 }
 0x19f   :  { %479 = vmatmul.f32.gmra.mxu0 %v450_v2  ;;  %551 = vmatmul.f32.gmra.mxu2 %v522_v3 }
 0x1a3   :  { %511 = vmatmul.f32.gmra.mxu1 %v435_v60 }
 0x1a7   :  { %482 = vmatmul.f32.gmra.mxu0 %v452_v7  ;;  %554 = vmatmul.f32.gmra.mxu2 %v524_v8  ;;  %v742_v7 = vld [vmem:[#allocation3 + $0x478] sm:$0xff] }
 0x1a8   :  { %v725_v8 = vld [vmem:[#allocation3 + $0x3f8] sm:$0xff]  ;;  %847 = vmatpush.msra.mxu2 %v742_v7 }
 0x1a9   :  { %775 = vmatpush.msrb.mxu0 %v725_v8  ;;  %v1218_v8 = vld [vmem:[%s1887_s4 + $0x2] sm:$0x3] }
 0x208   :  { %v503_v9 = vpop.f32.mrf.mxu1 }
 0x20c   :  { %v474_v10 = vpop.f32.mrf.mxu0 }
 0x20d   :  { %v504_v14 = vadd.f32 %v503_v9, %v474_v10  ;;  %v706_v9 = vld [vmem:[#allocation3 + $0x368] sm:$0xff]  ;;  %v741_v10 = vld [vmem:[#allocation3 + $0x470] sm:$0xff] }
 0x20e   :  { %806 = vmatpush.msra.mxu1 %v706_v9  ;;  %848 = vmatpush.msra.mxu2 %v741_v10 }
 0x210   :  { %v506_v12 = vpop.f32.mrf.mxu1 }
 0x212   :  { %v546_v11 = vpop.f32.mrf.mxu2 }
 0x213   :  { %v558_v17 = vadd.f32 %v546_v11, %v504_v14  ;;  %v724_v11 = vld [vmem:[#allocation3 + $0x3f0] sm:$0xff]  ;;  %v723_v14 = vld [vmem:[#allocation3 + $0x3e8] sm:$0xff] }
 0x214   :  { %v477_v13 = vpop.f32.mrf.mxu0  ;;  %776 = vmatpush.msrb.mxu0 %v724_v11 }
 0x215   :  { %v507_v15 = vadd.f32 %v506_v12, %v477_v13  ;;  %v1517_v23 = vadd.f32 %v1275_v18, %v558_v17  ;;  %v705_v12 = vld [vmem:[#allocation3 + $0x360] sm:$0xff]  ;;  %v740_v13 = vld [vmem:[#allocation3 + $0x468] sm:$0xff] }
 0x216   :  { %807 = vmatpush.msra.mxu1 %v705_v12  ;;  %849 = vmatpush.msra.mxu2 %v740_v13  ;;  %v722_v17 = vld [vmem:[#allocation3 + $0x3e0] sm:$0xff] }
 0x217   :  { %v587_v26 = vmul.f32 %v1517_v23, %v1517_v23  ;;  %777 = vmatpush.msrb.mxu0 %v723_v14 }
 0x218   :  { %v509_v22 = vpop.f32.mrf.mxu1 }
 0x219   :  { %778 = vmatpush.msrb.mxu0 %v722_v17 }
 0x21a   :  { %v549_v16 = vpop.f32.mrf.mxu2 }
 0x21b   :  { %v559_v19 = vadd.f32 %v549_v16, %v507_v15  ;;  %v704_v15 = vld [vmem:[#allocation3 + $0x358] sm:$0xff]  ;;  %v739_v16 = vld [vmem:[#allocation3 + $0x460] sm:$0xff] }
 0x21c   :  { %v480_v20 = vpop.f32.mrf.mxu0  ;;  %808 = vmatpush.msra.mxu1 %v704_v15  ;;  %850 = vmatpush.msra.mxu2 %v739_v16 }
 0x21d   :  { %v1515_v21 = vadd.f32 %v1275_v18, %v559_v19  ;;  %v510_v29 = vadd.f32 %v509_v22, %v480_v20  ;;  %v738_v19 = vld [vmem:[#allocation3 + $0x458] sm:$0xff]  ;;  %v702_v22 = vld [vmem:[#allocation3 + $0x348] sm:$0xff] }
 0x21e   :  { %v721_v20 = vld [vmem:[#allocation3 + $0x3d8] sm:$0xff]  ;;  %851 = vmatpush.msra.mxu2 %v738_v19 }
 0x21f   :  { %v588_v24 = vmul.f32 %v1515_v21, %v1515_v21  ;;  %v573_v27 = vadd.f32 %v1515_v21, %v1517_v23  ;;  %779 = vmatpush.msrb.mxu0 %v721_v20 }
 0x220   :  { %v512_v32 = vpop.f32.mrf.mxu1 }
 0x221   :  { %v591_v28 = vadd.f32 %v588_v24, %v587_v26  ;;  %v574_v33 = vrot.slane %v573_v27, 4  ;;  %v737_v24 = vld [vmem:[#allocation3 + $0x450] sm:$0xff]  ;;  %v701_v26 = vld [vmem:[#allocation3 + $0x340] sm:$0xff] }
 0x222   :  { %v552_v25 = vpop.f32.mrf.mxu2  ;;  %852 = vmatpush.msra.mxu2 %v737_v24 }
 0x223   :  { %v560_v31 = vadd.f32 %v552_v25, %v510_v29  ;;  %v592_v34 = vrot.slane %v591_v28, 4  ;;  %v575_v39 = vadd.f32 %v574_v33, %v573_v27  ;;  %v720_v25 = vld [vmem:[#allocation3 + $0x3d0] sm:$0xff]  ;;  %v736_v27 = vld [vmem:[#allocation3 + $0x448] sm:$0xff]  ;;  %v718_v33 = vld [vmem:[#allocation3 + $0x3c0] sm:$0xff] }
 0x224   :  { %v483_v30 = vpop.f32.mrf.mxu0  ;;  %780 = vmatpush.msrb.mxu0 %v720_v25  ;;  %853 = vmatpush.msra.mxu2 %v736_v27 }
 0x225   :  { %v513_v35 = vadd.f32 %v512_v32, %v483_v30  ;;  %v1525_v37 = vadd.f32 %v1275_v18, %v560_v31  ;;  %v593_v40 = vadd.f32 %v592_v34, %v591_v28  ;;  %v576_v47 = vrot.slane %v575_v39, 2  ;;  %v719_v28 = vld [vmem:[#allocation3 + $0x3c8] sm:$0xff]  ;;  %v700_v30 = vld [vmem:[#allocation3 + $0x338] sm:$0xff]  ;;  %v735_v32 = vld [vmem:[#allocation3 + $0x440] sm:$0xff] }
 0x226   :  { %781 = vmatpush.msrb.mxu0 %v719_v28  ;;  %854 = vmatpush.msra.mxu2 %v735_v32  ;;  %v699_v34 = vld [vmem:[#allocation3 + $0x330] sm:$0xff] }
 0x227   :  { %v589_v43 = vmul.f32 %v1525_v37, %v1525_v37  ;;  %v594_v48 = vrot.slane %v593_v40, 2  ;;  %v577_v51 = vadd.f32 %v576_v47, %v575_v39  ;;  %v698_v39 = vld [vmem:[#allocation3 + $0x328] sm:$0xff] }
 0x228   :  { %782 = vmatpush.msrb.mxu0 %v718_v33 }
 0x229   :  { %v595_v63 = vadd.f32 %v594_v48, %v593_v40  ;;  %v578_v55 = vrot.slane %v577_v51, 1  ;;  %v732_v48 = vld [vmem:[#allocation3 + $0x428] sm:$0xff] }
 0x22a   :  { %v555_v36 = vpop.f32.mrf.mxu2 }
 0x22b   :  { %v561_v38 = vadd.f32 %v555_v36, %v513_v35  ;;  %v596_v57 = vrot.slane %v595_v63, 1  ;;  %v579_v62 = vadd.f32 %v578_v55, %v577_v51  ;;  %v734_v36 = vld [vmem:[#allocation3 + $0x438] sm:$0xff]  ;;  %v695_v51 = vld [vmem:[#allocation3 + $0x310] sm:$0xff]  ;;  %v693_v55 = vld [vmem:[#allocation3 + $0x300] sm:$0xff] }
 0x22c   :  { %855 = vmatpush.msra.mxu2 %v734_v36 }
 0x22d   :  { %v1527_v42 = vadd.f32 %v1275_v18, %v561_v38  ;;  %v597_v0 = vadd.f32 %v596_v57, %v595_v63  ;;  %v703_v18 = vld [vmem:[#allocation3 + $0x350] sm:$0xff]  ;;  %v717_v38 = vld [vmem:[#allocation3 + $0x3b8] sm:$0xff]  ;;  %v694_v63 = vld [vmem:[#allocation3 + $0x308] sm:$0xff] }
 0x22e   :  { %809 = vmatpush.msra.mxu1 %v703_v18  ;;  %783 = vmatpush.msrb.mxu0 %v717_v38  ;;  %v711_v57 = vld [vmem:[#allocation3 + $0x388] sm:$0xff] }
 0x22f   :  { %v580_v45 = vadd.f32 %v1527_v42, %v1525_v37  ;;  %v590_v46 = vmul.f32 %v1527_v42, %v1527_v42 }
 0x230   :  { %810 = vmatpush.msra.mxu1 %v702_v22 }
 0x231   :  { %v581_v49 = vrot.slane %v580_v45, 4  ;;  %v598_v44 = vadd.f32 %v590_v46, %v589_v43  ;;  %v733_v43 = vld [vmem:[#allocation3 + $0x430] sm:$0xff]  ;;  %v697_v46 = vld [vmem:[#allocation3 + $0x320] sm:$0xff] }
 0x232   :  { %811 = vmatpush.msra.mxu1 %v701_v26  ;;  %856 = vmatpush.msra.mxu2 %v733_v43 }
 0x233   :  { %v582_v50 = vadd.f32 %v581_v49, %v580_v45  ;;  %v599_v41 = vrot.slane %v598_v44, 4  ;;  %v716_v45 = vld [vmem:[#allocation3 + $0x3b0] sm:$0xff]  ;;  %v715_v49 = vld [vmem:[#allocation3 + $0x3a8] sm:$0xff] }
 0x234   :  { %812 = vmatpush.msra.mxu1 %v700_v30  ;;  %784 = vmatpush.msrb.mxu0 %v716_v45 }
 0x235   :  { %v583_v52 = vrot.slane %v582_v50, 2  ;;  %v600_v59 = vadd.f32 %v599_v41, %v598_v44  ;;  %857 = vmatpush.msra.mxu2 %v732_v48  ;;  %v696_v44 = vld [vmem:[#allocation3 + $0x318] sm:$0xff]  ;;  %v714_v41 = vld [vmem:[#allocation3 + $0x3a0] sm:$0xff] }
 0x236   :  { %813 = vmatpush.msra.mxu1 %v699_v34  ;;  %785 = vmatpush.msrb.mxu0 %v715_v49 }
 0x237   :  { %v584_v53 = vadd.f32 %v583_v52, %v582_v50  ;;  %v601_v54 = vrot.slane %v600_v59, 2  ;;  %v731_v50 = vld [vmem:[#allocation3 + $0x420] sm:$0xff]  ;;  %v730_v52 = vld [vmem:[#allocation3 + $0x418] sm:$0xff] }
 0x238   :  { %814 = vmatpush.msra.mxu1 %v698_v39  ;;  %858 = vmatpush.msra.mxu2 %v731_v50 }
 0x239   :  { %v585_v56 = vrot.slane %v584_v53, 1  ;;  %v602_v58 = vadd.f32 %v601_v54, %v600_v59  ;;  %786 = vmatpush.msrb.mxu0 %v714_v41  ;;  %v713_v59 = vld [vmem:[#allocation3 + $0x398] sm:$0xff]  ;;  %v712_v54 = vld [vmem:[#allocation3 + $0x390] sm:$0xff] }
 0x23a   :  { %815 = vmatpush.msra.mxu1 %v697_v46  ;;  %859 = vmatpush.msra.mxu2 %v730_v52  ;;  %v946_v52 = vld [vmem:[%s1890_s7 + $0x70] sm:$0xff] }
 0x23b   :  { %v586_v60 = vadd.f32 %v585_v56, %v584_v53  ;;  %v603_v61 = vrot.slane %v602_v58, 1  ;;  %v729_v53 = vld [vmem:[#allocation3 + $0x410] sm:$0xff]  ;;  %787 = vmatpush.msrb.mxu0 %v713_v59  ;;  %v728_v56 = vld [vmem:[#allocation3 + $0x408] sm:$0xff]  ;;  %v945_v59 = vld [vmem:[%s1890_s7 + $0x68] sm:$0xff] }
 0x23c   :  { %816 = vmatpush.msra.mxu1 %v696_v44  ;;  %860 = vmatpush.msra.mxu2 %v729_v53 }
 0x23d   :  { %v604_v1 = vadd.f32 %v603_v61, %v602_v58  ;;  %v607_v2 = vsel %vm286_vm2, %v586_v60, %v579_v62  ;;  %788 = vmatpush.msrb.mxu0 %v712_v54  ;;  %v727_v60 = vld [vmem:[#allocation3 + $0x400] sm:$0xff]  ;;  %v943_v54 = vld [vmem:[%s1890_s7 + $0x58] sm:$0xff] }
 0x23e   :  { %817 = vmatpush.msra.mxu1 %v695_v51  ;;  %v710_v61 = vld [vmem:[#allocation3 + $0x380] sm:$0xff]  ;;  %861 = vmatpush.msra.mxu2 %v728_v56  ;;  %v947_v51 = vld [vmem:[%s1890_s7 + $0x78] sm:$0xff] }
 0x23f   :  { %v611_v3 = vsel %vm291_vm3, %v604_v1, %v597_v0  ;;  %789 = vmatpush.msrb.mxu0 %v711_v57  ;;  %948 = vmatpush.msrb.mxu3 %v947_v51  ;;  %v942_v56 = vld [vmem:[%s1890_s7 + $0x50] sm:$0xff]  ;;  %v941_v57 = vld [vmem:[%s1890_s7 + $0x48] sm:$0xff] }
 0x240   :  { %v613_v4 = vsel %vm294_vm4, %v607_v2, %v611_v3  ;;  %818 = vmatpush.msra.mxu1 %v694_v63  ;;  %862 = vmatpush.msra.mxu2 %v727_v60  ;;  %v944_v63 = vld [vmem:[%s1890_s7 + $0x60] sm:$0xff] }
 0x241   :  { %646 = vmatmul.f32.vlgmr.msra.gmra.mxu3 %v613_v4  ;;  %790 = vmatpush.msrb.mxu0 %v710_v61  ;;  %v1217_v4 = vld [vmem:[%s1886_s3 + $0x2] sm:$0x3]  ;;  %v939_v61 = vld [vmem:[%s1890_s7 + $0x38] sm:$0xff] }
 0x242   :  { %819 = vmatpush.msra.mxu1 %v693_v55  ;;  %949 = vmatpush.msrb.mxu3 %v946_v52 }
 0x244   :  { %950 = vmatpush.msrb.mxu3 %v945_v59 }
 0x246   :  { %951 = vmatpush.msrb.mxu3 %v944_v63 }
 0x248   :  { %952 = vmatpush.msrb.mxu3 %v943_v54 }
 0x24a   :  { %953 = vmatpush.msrb.mxu3 %v942_v56 }
 0x24c   :  { %954 = vmatpush.msrb.mxu3 %v941_v57 }
 0x2c4   :  { %v1538_v29 = vpop.f32.mrf.mxu3 }
 0x2c5   :  { %v650_v31 = vmul.f32 %v1538_v29, %v1538_v29 }
 0x2c7   :  { %v652_v35 = vrot.slane %v650_v31, 6 }
 0x2c9   :  { %v654_v40 = vsub.f32 %v1538_v29, %v652_v35 }
 0x2cb   :  { %v655_v47 = vadd.f32 1e-05, %v654_v40 }
 0x2cd   :  { %1280 = vrsqrt.f32 %v655_v47  ;;  %vm662_vm9 = vweird.f32 %v655_v47 }
 0x2d3   :  { %v1281_v58 = vpop.eup %1280 }
 0x2d4   :  { %v657_v62 = vmul.f32 %v1281_v58, %v655_v47  ;;  %vm663_vm8 = vweird.f32 %v1281_v58 }
 0x2d5   :  { %vm664_vm10 = vmor %vm662_vm9, %vm663_vm8 }
 0x2d6   :  { %v658_v0 = vmul.f32 %v1281_v58, %v657_v62 }
 0x2d8   :  { %v659_v1 = vmul.f32 0.5, %v658_v0 }
 0x2da   :  { %v660_v2 = vsub.f32 1.5, %v659_v1  ;;  %v938_v1 = vld [vmem:[%s1890_s7 + $0x30] sm:$0xff] }
 0x2dc   :  { %v661_v3 = vmul.f32 %v1281_v58, %v660_v2  ;;  %v937_v2 = vld [vmem:[%s1890_s7 + $0x28] sm:$0xff] }
 0x2de   :  { %v665_v5 = vsel %vm664_vm10, %v1281_v58, %v661_v3  ;;  %v940_v58 = vld [vmem:[%s1890_s7 + $0x40] sm:$0xff] }
 0x2df   :  { %v667_v6 = vrot.slane %v665_v5, 2  ;;  %955 = vmatpush.msrb.mxu3 %v940_v58  ;;  %v936_v3 = vld [vmem:[%s1890_s7 + $0x20] sm:$0xff] }
 0x2e1   :  { %v669_v7 = vmul.f32 %v1217_v4, %v667_v6  ;;  %956 = vmatpush.msrb.mxu3 %v939_v61  ;;  %v935_v4 = vld [vmem:[%s1890_s7 + $0x18] sm:$0xff] }
 0x2e3   :  { %v670_v9 = vmul.f32 %v669_v7, %v1538_v29  ;;  %v673_v10 = vrot.slane %v669_v7, 1  ;;  %v674_v11 = vperm.slane %v669_v7, 0  ;;  %957 = vmatpush.msrb.mxu3 %v938_v1  ;;  %v1253_v1 = vld [vmem:[%s1888_s5 + $0x178] sm:$0xff] }
 0x2e4   :  { %1163 = vmatpush.msrb.mxu2 %v1253_v1 }
 0x2e5   :  { %v671_v12 = vsub.f32 %v1218_v8, %v670_v9  ;;  %v675_v13 = vperm.slane %v673_v10, 0  ;;  %v678_v14 = vmul.f32 %v674_v11, %v1517_v23  ;;  %v679_v15 = vmul.f32 %v674_v11, %v1515_v21  ;;  %958 = vmatpush.msrb.mxu3 %v937_v2  ;;  %v934_v8 = vld [vmem:[%s1890_s7 + $0x10] sm:$0xff]  ;;  %v1276_v10 = vld [vmem:[%s1885_s2 + $0x2] ss:$0 sm:$0xff] }
 0x2e6   :  { %v1651_v2 = vld [vmem:[%s1888_s5 + $0x70] sm:$0xff] }
 0x2e7   :  { %v683_v16 = vrot.slane %v671_v12, 1  ;;  %v684_v17 = vperm.slane %v671_v12, 0  ;;  %v680_v18 = vmul.f32 %v675_v13, %v1525_v37  ;;  %v681_v19 = vmul.f32 %v675_v13, %v1527_v42  ;;  %959 = vmatpush.msrb.mxu3 %v936_v3  ;;  %v933_v13 = vld [vmem:[%s1890_s7 + $0x8] sm:$0xff]  ;;  %v1236_v3 = vld [vmem:[%s1888_s5 + $0xf0] sm:$0xff] }
 0x2e9   :  { %v685_v20 = vperm.slane %v683_v16, 0  ;;  %v688_v22 = vadd.f32 %v684_v17, %v678_v14  ;;  %v689_v24 = vadd.f32 %v684_v17, %v679_v15  ;;  %960 = vmatpush.msrb.mxu3 %v935_v4  ;;  %v932_v16 = vld [vmem:[%s1890_s7] sm:$0xff]  ;;  %v1252_v4 = vld [vmem:[%s1888_s5 + $0x170] sm:$0xff] }
 0x2ea   :  { %1164 = vmatpush.msrb.mxu2 %v1252_v4 }
 0x2eb   :  { %v690_v25 = vadd.f32 %v685_v20, %v680_v18  ;;  %v691_v26 = vadd.f32 %v685_v20, %v681_v19  ;;  %745 = vst [vmem:[#allocation2 + $0x1] sm:$0xff] %v688_v22  ;;  %961 = vmatpush.msrb.mxu3 %v934_v8  ;;  %v1675_v8 = vld [vmem:[%s1888_s5 + $0x60] sm:$0xff] }
 0x2ec   :  { %746 = vst [vmem:[#allocation2 + $0x9] sm:$0xff] %v689_v24 }
 0x2ed   :  { %747 = vst [vmem:[#allocation2 + $0x19] sm:$0xff] %v690_v25  ;;  %962 = vmatpush.msrb.mxu3 %v933_v13  ;;  %v1249_v13 = vld [vmem:[%s1888_s5 + $0x158] sm:$0xff] }
 0x2ee   :  { %748 = vst [vmem:[#allocation2 + $0x21] sm:$0xff] %v691_v26 }
 0x2ef   :  { %963 = vmatpush.msrb.mxu3 %v932_v16  ;;  %v1232_v16 = vld [vmem:[%s1888_s5 + $0xd0] sm:$0xff] }
 0x2f2   :  { %v749_v27 = vld [vmem:[#allocation2] sm:$0xff] }
 0x2f3   :  { %820 = vmatmul.f32.vlgmr.msra.gmra.mxu1 %v749_v27  ;;  %v833_v23 = vrot.slane %v749_v27, 2  ;;  %v750_v28 = vld [vmem:[#allocation2 + $0x8] sm:$0xff]  ;;  %v761_v21 = vrot.slane %v749_v27, 1  ;;  %v751_v31 = vld [vmem:[#allocation2 + $0x10] sm:$0x3] }
 0x2f4   :  { %v762_v29 = vrot.slane %v750_v28, 1  ;;  %v834_v30 = vrot.slane %v750_v28, 2  ;;  %v764_v32 = vrot.slane %v751_v31, 1  ;;  %v836_v33 = vrot.slane %v751_v31, 2  ;;  %v752_v36 = vld [vmem:[#allocation2 + $0x18] sm:$0xff] }
 0x2f5   :  { %v753_v38 = vld [vmem:[#allocation2 + $0x20] sm:$0xff]  ;;  %v766_v39 = vrot.slane %v752_v36, 1  ;;  %v838_v43 = vrot.slane %v752_v36, 2  ;;  %v754_v48 = vld [vmem:[#allocation2 + $0x28] sm:$0x3] }
 0x2f6   :  { %v763_v37 = vsel %vm122_vm0, %v761_v21, %v762_v29  ;;  %v835_v42 = vsel %vm195_vm1, %v833_v23, %v834_v30  ;;  %v765_v34 = vsel %vm122_vm0, %v762_v29, %v764_v32  ;;  %v837_v35 = vsel %vm195_vm1, %v834_v30, %v836_v33 }
 0x2f7   :  { %791 = vmatmul.f32.vlgmr.msrb.gmra.mxu0 %v763_v37  ;;  %863 = vmatmul.f32.vlgmr.msra.gmra.mxu2 %v835_v42  ;;  %v767_v40 = vrot.slane %v753_v38, 1  ;;  %v839_v45 = vrot.slane %v753_v38, 2  ;;  %v769_v49 = vrot.slane %v754_v48, 1  ;;  %v841_v44 = vrot.slane %v754_v48, 2 }
 0x2f9   :  { %v768_v46 = vsel %vm122_vm0, %v766_v39, %v767_v40  ;;  %v840_v47 = vsel %vm195_vm1, %v838_v43, %v839_v45  ;;  %v770_v50 = vsel %vm122_vm0, %v767_v40, %v769_v49  ;;  %v842_v41 = vsel %vm195_vm1, %v839_v45, %v841_v44 }
 0x2fb   :  { %823 = vmatmul.f32.gmra.mxu1 %v750_v28 }
 0x2ff   :  { %794 = vmatmul.f32.gmra.mxu0 %v765_v34  ;;  %866 = vmatmul.f32.gmra.mxu2 %v837_v35 }
 0x303   :  { %826 = vmatmul.f32.gmra.mxu1 %v752_v36 }
 0x307   :  { %797 = vmatmul.f32.gmra.mxu0 %v768_v46  ;;  %869 = vmatmul.f32.gmra.mxu2 %v840_v47 }
 0x30b   :  { %829 = vmatmul.f32.gmra.mxu1 %v753_v38 }
 0x30f   :  { %800 = vmatmul.f32.gmra.mxu0 %v770_v50  ;;  %872 = vmatmul.f32.gmra.mxu2 %v842_v41 }
 0x370   :  { %v821_v53 = vpop.f32.mrf.mxu1 }
 0x374   :  { %v792_v55 = vpop.f32.mrf.mxu0 }
 0x375   :  { %v822_v5 = vadd.f32 %v821_v53, %v792_v55 }
 0x378   :  { %v824_v62 = vpop.f32.mrf.mxu1 }
 0x37a   :  { %v864_v60 = vpop.f32.mrf.mxu2 }
 0x37b   :  { %v876_v9 = vadd.f32 %v864_v60, %v822_v5  ;;  %v1663_v5 = vld [vmem:[%s1888_s5 + $0x68] sm:$0xff] }
 0x37c   :  { %v795_v0 = vpop.f32.mrf.mxu0 }
 0x37d   :  { %v825_v6 = vadd.f32 %v824_v62, %v795_v0  ;;  %v1615_v17 = vadd.f32 %v1276_v10, %v876_v9  ;;  %v1639_v62 = vld [vmem:[%s1888_s5 + $0x78] sm:$0xff]  ;;  %v1234_v9 = vld [vmem:[%s1888_s5 + $0xe0] sm:$0xff] }
 0x37e   :  { %v1237_v0 = vld [vmem:[%s1888_s5 + $0xf8] sm:$0xff]  ;;  %1254 = vmatpush.msrb.mxu1 %v1639_v62 }
 0x37f   :  { %v905_v20 = vmul.f32 %v1615_v17, %v1615_v17  ;;  %1091 = vmatpush.msra.mxu0 %v1237_v0 }
 0x380   :  { %v827_v15 = vpop.f32.mrf.mxu1  ;;  %1255 = vmatpush.msrb.mxu1 %v1651_v2 }
 0x381   :  { %1092 = vmatpush.msra.mxu0 %v1236_v3 }
 0x382   :  { %v867_v7 = vpop.f32.mrf.mxu2  ;;  %1256 = vmatpush.msrb.mxu1 %v1663_v5 }
 0x383   :  { %v877_v11 = vadd.f32 %v867_v7, %v825_v6  ;;  %v1235_v6 = vld [vmem:[%s1888_s5 + $0xe8] sm:$0xff] }
 0x384   :  { %v798_v12 = vpop.f32.mrf.mxu0  ;;  %v1251_v7 = vld [vmem:[%s1888_s5 + $0x168] sm:$0xff]  ;;  %1093 = vmatpush.msra.mxu0 %v1235_v6  ;;  %1257 = vmatpush.msrb.mxu1 %v1675_v8 }
 0x385   :  { %v1610_v14 = vadd.f32 %v1276_v10, %v877_v11  ;;  %v828_v25 = vadd.f32 %v827_v15, %v798_v12  ;;  %1165 = vmatpush.msrb.mxu2 %v1251_v7  ;;  %v1687_v11 = vld [vmem:[%s1888_s5 + $0x58] sm:$0xff]  ;;  %v1699_v15 = vld [vmem:[%s1888_s5 + $0x50] sm:$0xff] }
 0x386   :  { %1094 = vmatpush.msra.mxu0 %v1234_v9  ;;  %v1233_v12 = vld [vmem:[%s1888_s5 + $0xd8] sm:$0xff]  ;;  %1258 = vmatpush.msrb.mxu1 %v1687_v11 }
 0x387   :  { %v906_v18 = vmul.f32 %v1610_v14, %v1610_v14  ;;  %v891_v22 = vadd.f32 %v1610_v14, %v1615_v17 }
 0x388   :  { %v830_v23 = vpop.f32.mrf.mxu1  ;;  %1095 = vmatpush.msra.mxu0 %v1233_v12  ;;  %1259 = vmatpush.msrb.mxu1 %v1699_v15 }
 0x389   :  { %v909_v24 = vadd.f32 %v906_v18, %v905_v20  ;;  %v892_v28 = vrot.slane %v891_v22, 4  ;;  %v1248_v18 = vld [vmem:[%s1888_s5 + $0x150] sm:$0xff]  ;;  %v1231_v20 = vld [vmem:[%s1888_s5 + $0xc8] sm:$0xff] }
 0x38a   :  { %v870_v19 = vpop.f32.mrf.mxu2  ;;  %1096 = vmatpush.msra.mxu0 %v1232_v16 }
 0x38b   :  { %v878_v27 = vadd.f32 %v870_v19, %v828_v25  ;;  %v910_v21 = vrot.slane %v909_v24, 4  ;;  %v893_v31 = vadd.f32 %v892_v28, %v891_v22  ;;  %v1711_v19 = vld [vmem:[%s1888_s5 + $0x48] sm:$0xff]  ;;  %v1725_v25 = vld [vmem:[%s1888_s5 + $0x40] sm:$0xff]  ;;  %v1739_v28 = vld [vmem:[%s1888_s5 + $0x38] sm:$0xff] }
 0x38c   :  { %v801_v26 = vpop.f32.mrf.mxu0  ;;  %1260 = vmatpush.msrb.mxu1 %v1711_v19  ;;  %v1247_v22 = vld [vmem:[%s1888_s5 + $0x148] sm:$0xff]  ;;  %1097 = vmatpush.msra.mxu0 %v1231_v20 }
 0x38d   :  { %v831_v29 = vadd.f32 %v830_v23, %v801_v26  ;;  %v1623_v37 = vadd.f32 %v1276_v10, %v878_v27  ;;  %v911_v32 = vadd.f32 %v910_v21, %v909_v24  ;;  %v894_v38 = vrot.slane %v893_v31, 2  ;;  %v1230_v27 = vld [vmem:[%s1888_s5 + $0xc0] sm:$0xff] }
 0x38e   :  { %1261 = vmatpush.msrb.mxu1 %v1725_v25  ;;  %v1246_v23 = vld [vmem:[%s1888_s5 + $0x140] sm:$0xff]  ;;  %1098 = vmatpush.msra.mxu0 %v1230_v27 }
 0x38f   :  { %v907_v34 = vmul.f32 %v1623_v37, %v1623_v37  ;;  %v912_v39 = vrot.slane %v911_v32, 2  ;;  %v895_v47 = vadd.f32 %v894_v38, %v893_v31  ;;  %v1227_v38 = vld [vmem:[%s1888_s5 + $0xa8] sm:$0xff] }
 0x390   :  { %1262 = vmatpush.msrb.mxu1 %v1739_v28 }
 0x391   :  { %v913_v44 = vadd.f32 %v912_v39, %v911_v32  ;;  %v896_v51 = vrot.slane %v895_v47, 1  ;;  %v1228_v32 = vld [vmem:[%s1888_s5 + $0xb0] sm:$0xff]  ;;  %v1243_v39 = vld [vmem:[%s1888_s5 + $0x128] sm:$0xff] }
 0x392   :  { %v873_v30 = vpop.f32.mrf.mxu2 }
 0x393   :  { %v879_v42 = vadd.f32 %v873_v30, %v831_v29  ;;  %v914_v59 = vrot.slane %v913_v44, 1  ;;  %v897_v55 = vadd.f32 %v896_v51, %v895_v47  ;;  %v1229_v29 = vld [vmem:[%s1888_s5 + $0xb8] sm:$0xff]  ;;  %v1223_v51 = vld [vmem:[%s1888_s5 + $0x88] sm:$0xff] }
 0x394   :  { %v1245_v30 = vld [vmem:[%s1888_s5 + $0x138] sm:$0xff]  ;;  %1099 = vmatpush.msra.mxu0 %v1229_v29 }
 0x395   :  { %v1625_v33 = vadd.f32 %v1276_v10, %v879_v42  ;;  %v915_v56 = vadd.f32 %v914_v59, %v913_v44  ;;  %v1250_v10 = vld [vmem:[%s1888_s5 + $0x160] sm:$0xff]  ;;  %v1751_v42 = vld [vmem:[%s1888_s5 + $0x30] sm:$0xff]  ;;  %v1791_v47 = vld [vmem:[%s1888_s5 + $0x18] sm:$0xff] }
 0x396   :  { %1166 = vmatpush.msrb.mxu2 %v1250_v10  ;;  %1263 = vmatpush.msrb.mxu1 %v1751_v42  ;;  %v1803_v44 = vld [vmem:[%s1888_s5 + $0x10] sm:$0xff]  ;;  %v1823_v59 = vld [vmem:[%s1888_s5] sm:$0xff] }
 0x397   :  { %v898_v35 = vadd.f32 %v1625_v33, %v1623_v37  ;;  %v908_v36 = vmul.f32 %v1625_v33, %v1625_v33  ;;  %1100 = vmatpush.msra.mxu0 %v1228_v32 }
 0x398   :  { %1167 = vmatpush.msrb.mxu2 %v1249_v13 }
 0x399   :  { %v899_v40 = vrot.slane %v898_v35, 4  ;;  %v916_v43 = vadd.f32 %v908_v36, %v907_v34  ;;  %v1244_v34 = vld [vmem:[%s1888_s5 + $0x130] sm:$0xff]  ;;  %1101 = vmatpush.msra.mxu0 %v1227_v38 }
 0x39a   :  { %1168 = vmatpush.msrb.mxu2 %v1248_v18 }
 0x39b   :  { %v900_v45 = vadd.f32 %v899_v40, %v898_v35  ;;  %v917_v46 = vrot.slane %v916_v43, 4  ;;  %v1764_v35 = vld [vmem:[%s1888_s5 + $0x28] sm:$0xff]  ;;  %v1776_v40 = vld [vmem:[%s1888_s5 + $0x20] sm:$0xff] }
 0x39c   :  { %1169 = vmatpush.msrb.mxu2 %v1247_v22  ;;  %1264 = vmatpush.msrb.mxu1 %v1764_v35 }
 0x39d   :  { %v901_v48 = vrot.slane %v900_v45, 2  ;;  %v918_v49 = vadd.f32 %v917_v46, %v916_v43  ;;  %v1226_v43 = vld [vmem:[%s1888_s5 + $0xa0] sm:$0xff]  ;;  %v1225_v46 = vld [vmem:[%s1888_s5 + $0x98] sm:$0xff] }
 0x39e   :  { %1170 = vmatpush.msrb.mxu2 %v1246_v23  ;;  %1265 = vmatpush.msrb.mxu1 %v1776_v40 }
 0x39f   :  { %v902_v50 = vadd.f32 %v901_v48, %v900_v45  ;;  %v919_v41 = vrot.slane %v918_v49, 2  ;;  %v1242_v45 = vld [vmem:[%s1888_s5 + $0x120] sm:$0xff]  ;;  %1102 = vmatpush.msra.mxu0 %v1226_v43  ;;  %v1241_v48 = vld [vmem:[%s1888_s5 + $0x118] sm:$0xff] }
 0x3a0   :  { %1171 = vmatpush.msrb.mxu2 %v1245_v30  ;;  %1266 = vmatpush.msrb.mxu1 %v1791_v47 }
 0x3a1   :  { %v903_v52 = vrot.slane %v902_v50, 1  ;;  %v920_v63 = vadd.f32 %v919_v41, %v918_v49  ;;  %v1224_v49 = vld [vmem:[%s1888_s5 + $0x90] sm:$0xff]  ;;  %1103 = vmatpush.msra.mxu0 %v1225_v46  ;;  %v1811_v41 = vld [vmem:[%s1888_s5 + $0x8] sm:$0xff] }
 0x3a2   :  { %1172 = vmatpush.msrb.mxu2 %v1244_v34  ;;  %1267 = vmatpush.msrb.mxu1 %v1803_v44 }
 0x3a3   :  { %v904_v53 = vadd.f32 %v903_v52, %v902_v50  ;;  %v921_v54 = vrot.slane %v920_v63, 1  ;;  %v1240_v50 = vld [vmem:[%s1888_s5 + $0x110] sm:$0xff]  ;;  %v1239_v52 = vld [vmem:[%s1888_s5 + $0x108] sm:$0xff]  ;;  %1104 = vmatpush.msra.mxu0 %v1224_v49 }
 0x3a4   :  { %1173 = vmatpush.msrb.mxu2 %v1243_v39  ;;  %1268 = vmatpush.msrb.mxu1 %v1811_v41 }
 0x3a5   :  { %v922_v57 = vadd.f32 %v921_v54, %v920_v63  ;;  %v925_v58 = vsel %vm286_vm2, %v904_v53, %v897_v55  ;;  %v1222_v53 = vld [vmem:[%s1888_s5 + $0x80] sm:$0xff]  ;;  %1105 = vmatpush.msra.mxu0 %v1223_v51 }
 0x3a6   :  { %1174 = vmatpush.msrb.mxu2 %v1242_v45  ;;  %1269 = vmatpush.msrb.mxu1 %v1823_v59  ;;  %v1238_v55 = vld [vmem:[%s1888_s5 + $0x100] sm:$0xff] }
 0x3a7   :  { %v929_v60 = vsel %vm291_vm3, %v922_v57, %v915_v56  ;;  %1106 = vmatpush.msra.mxu0 %v1222_v53 }
 0x3a8   :  { %v931_v61 = vsel %vm294_vm4, %v925_v58, %v929_v60  ;;  %1175 = vmatpush.msrb.mxu2 %v1241_v48 }
 0x3a9   :  { %964 = vmatmul.f32.vlgmr.msrb.gmra.mxu3 %v931_v61  ;;  %1120 = vmatpush.msrb.mxu0 %v1639_v62  ;;  %v1220_v61 = vld [vmem:[%s1886_s3 + $0x4] sm:$0x3] }
 0x3aa   :  { %1176 = vmatpush.msrb.mxu2 %v1240_v50 }
 0x3ab   :  { %1121 = vmatpush.msrb.mxu0 %v1651_v2  ;;  %v1221_v2 = vld [vmem:[%s1887_s4 + $0x4] sm:$0x3] }
 0x3ac   :  { %1177 = vmatpush.msrb.mxu2 %v1239_v52 }
 0x3ad   :  { %1122 = vmatpush.msrb.mxu0 %v1663_v5 }
 0x3ae   :  { %1178 = vmatpush.msrb.mxu2 %v1238_v55 }
 0x3af   :  { %1123 = vmatpush.msrb.mxu0 %v1675_v8 }
 0x3b1   :  { %1124 = vmatpush.msrb.mxu0 %v1687_v11 }
 0x3b3   :  { %1125 = vmatpush.msrb.mxu0 %v1699_v15 }
 0x3b5   :  { %1126 = vmatpush.msrb.mxu0 %v1711_v19 }
 0x3b7   :  { %1127 = vmatpush.msrb.mxu0 %v1725_v25 }
 0x3b9   :  { %1128 = vmatpush.msrb.mxu0 %v1739_v28 }
 0x3bb   :  { %1129 = vmatpush.msrb.mxu0 %v1751_v42 }
 0x3bd   :  { %1130 = vmatpush.msrb.mxu0 %v1764_v35 }
 0x3bf   :  { %1131 = vmatpush.msrb.mxu0 %v1776_v40 }
 0x3c1   :  { %1132 = vmatpush.msrb.mxu0 %v1791_v47 }
 0x3c3   :  { %1133 = vmatpush.msrb.mxu0 %v1803_v44 }
 0x3c5   :  { %1134 = vmatpush.msrb.mxu0 %v1811_v41 }
 0x3c7   :  { %1135 = vmatpush.msrb.mxu0 %v1823_v59 }
 0x42c   :  { %v1720_v24 = vpop.f32.mrf.mxu3 }
 0x42d   :  { %v968_v26 = vmul.f32 %v1720_v24, %v1720_v24 }
 0x42f   :  { %v970_v21 = vrot.slane %v968_v26, 6 }
 0x431   :  { %v972_v31 = vsub.f32 %v1720_v24, %v970_v21 }
 0x433   :  { %v973_v36 = vadd.f32 1e-05, %v972_v31 }
 0x435   :  { %1282 = vrsqrt.f32 %v973_v36  ;;  %vm980_vm12 = vweird.f32 %v973_v36 }
 0x43b   :  { %v1283_v63 = vpop.eup %1282 }
 0x43c   :  { %v975_v54 = vmul.f32 %v1283_v63, %v973_v36  ;;  %vm981_vm11 = vweird.f32 %v1283_v63 }
 0x43d   :  { %vm982_vm13 = vmor %vm980_vm12, %vm981_vm11 }
 0x43e   :  { %v976_v56 = vmul.f32 %v1283_v63, %v975_v54 }
 0x440   :  { %v977_v57 = vmul.f32 0.5, %v976_v56 }
 0x442   :  { %v978_v58 = vsub.f32 1.5, %v977_v57 }
 0x444   :  { %v979_v60 = vmul.f32 %v1283_v63, %v978_v58 }
 0x446   :  { %v983_v0 = vsel %vm982_vm13, %v1283_v63, %v979_v60  ;;  %v1277_v63 = vld [vmem:[%s1889_s6] ss:$0 sm:$0xff] }
 0x447   :  { %v985_v1 = vrot.slane %v983_v0, 2 }
 0x449   :  { %v987_v62 = vmul.f32 %v1220_v61, %v985_v1 }
 0x44b   :  { %v988_v3 = vmul.f32 %v987_v62, %v1720_v24  ;;  %v991_v4 = vrot.slane %v987_v62, 1  ;;  %v992_v5 = vperm.slane %v987_v62, 0 }
 0x44d   :  { %v989_v6 = vsub.f32 %v1221_v2, %v988_v3  ;;  %v993_v7 = vperm.slane %v991_v4, 0  ;;  %v996_v8 = vmul.f32 %v992_v5, %v1615_v17  ;;  %v997_v9 = vmul.f32 %v992_v5, %v1610_v14 }
 0x44f   :  { %v1001_v10 = vrot.slane %v989_v6, 1  ;;  %v1002_v11 = vperm.slane %v989_v6, 0  ;;  %v998_v12 = vmul.f32 %v993_v7, %v1623_v37  ;;  %v999_v13 = vmul.f32 %v993_v7, %v1625_v33 }
 0x451   :  { %v1003_v15 = vperm.slane %v1001_v10, 0  ;;  %v1006_v16 = vadd.f32 %v1002_v11, %v996_v8  ;;  %v1007_v18 = vadd.f32 %v1002_v11, %v997_v9 }
 0x453   :  { %v1008_v19 = vadd.f32 %v1003_v15, %v998_v12  ;;  %v1009_v20 = vadd.f32 %v1003_v15, %v999_v13  ;;  %1061 = vst [vmem:[#allocation2 + $0x1] sm:$0xff] %v1006_v16 }
 0x454   :  { %1062 = vst [vmem:[#allocation2 + $0x9] sm:$0xff] %v1007_v18 }
 0x455   :  { %1063 = vst [vmem:[#allocation2 + $0x19] sm:$0xff] %v1008_v19 }
 0x456   :  { %1064 = vst [vmem:[#allocation2 + $0x21] sm:$0xff] %v1009_v20 }
 0x45a   :  { %v1065_v14 = vld [vmem:[#allocation2] sm:$0xff] }
 0x45b   :  { %v1066_v17 = vld [vmem:[#allocation2 + $0x8] sm:$0xff]  ;;  %v1077_v37 = vrot.slane %v1065_v14, 1  ;;  %v1149_v33 = vrot.slane %v1065_v14, 2  ;;  %v1067_v23 = vld [vmem:[#allocation2 + $0x10] sm:$0x3] }
 0x45c   :  { %v1078_v22 = vrot.slane %v1066_v17, 1  ;;  %v1150_v24 = vrot.slane %v1066_v17, 2  ;;  %v1080_v28 = vrot.slane %v1067_v23, 1  ;;  %v1152_v21 = vrot.slane %v1067_v23, 2  ;;  %v1068_v42 = vld [vmem:[#allocation2 + $0x18] sm:$0xff] }
 0x45d   :  { %v1069_v25 = vld [vmem:[#allocation2 + $0x20] sm:$0xff]  ;;  %v1082_v31 = vrot.slane %v1068_v42, 1  ;;  %v1154_v34 = vrot.slane %v1068_v42, 2  ;;  %v1070_v39 = vld [vmem:[#allocation2 + $0x28] sm:$0x3] }
 0x45e   :  { %1145 = vmatmul.f32.vlgmr.msrb.gmra.mxu1 %v1069_v25  ;;  %v1079_v26 = vsel %vm122_vm0, %v1077_v37, %v1078_v22  ;;  %v1151_v27 = vsel %vm195_vm1, %v1149_v33, %v1150_v24  ;;  %v1081_v29 = vsel %vm122_vm0, %v1078_v22, %v1080_v28  ;;  %v1153_v30 = vsel %vm195_vm1, %v1150_v24, %v1152_v21 }
 0x45f   :  { %1107 = vmatmul.f32.vlgmr.msra.gmra.mxu0 %v1079_v26  ;;  %1179 = vmatmul.f32.vlgmr.msrb.gmra.mxu2 %v1151_v27  ;;  %v1083_v32 = vrot.slane %v1069_v25, 1  ;;  %v1155_v35 = vrot.slane %v1069_v25, 2  ;;  %v1085_v40 = vrot.slane %v1070_v39, 1  ;;  %v1157_v43 = vrot.slane %v1070_v39, 2 }
 0x461   :  { %v1084_v36 = vsel %vm122_vm0, %v1082_v31, %v1083_v32  ;;  %v1156_v38 = vsel %vm195_vm1, %v1154_v34, %v1155_v35  ;;  %v1086_v45 = vsel %vm122_vm0, %v1083_v32, %v1085_v40  ;;  %v1158_v46 = vsel %vm195_vm1, %v1155_v35, %v1157_v43 }
 0x467   :  { %1110 = vmatmul.f32.gmra.mxu0 %v1081_v29  ;;  %1182 = vmatmul.f32.gmra.mxu2 %v1153_v30 }
 0x46f   :  { %1113 = vmatmul.f32.gmra.mxu0 %v1084_v36  ;;  %1185 = vmatmul.f32.gmra.mxu2 %v1156_v38 }
 0x477   :  { %1116 = vmatmul.f32.gmra.mxu0 %v1086_v45  ;;  %1188 = vmatmul.f32.gmra.mxu2 %v1158_v46 }
 0x47f   :  { %1136 = vmatmul.f32.vlgmr.msrb.gmra.mxu0 %v1065_v14 }
 0x487   :  { %1139 = vmatmul.f32.gmra.mxu0 %v1066_v17 }
 0x48f   :  { %1142 = vmatmul.f32.gmra.mxu0 %v1068_v42 }
 0x4db   :  { %v1146_v52 = vpop.f32.mrf.mxu1 }
 0x4dc   :  { %v1108_v47 = vpop.f32.mrf.mxu0 }
 0x4e2   :  { %v1180_v48 = vpop.f32.mrf.mxu2 }
 0x4e4   :  { %v1111_v49 = vpop.f32.mrf.mxu0 }
 0x4ea   :  { %v1183_v44 = vpop.f32.mrf.mxu2 }
 0x4ec   :  { %v1114_v50 = vpop.f32.mrf.mxu0 }
 0x4f2   :  { %v1186_v41 = vpop.f32.mrf.mxu2 }
 0x4f4   :  { %v1117_v51 = vpop.f32.mrf.mxu0 }
 0x4f5   :  { %v1147_v59 = vadd.f32 %v1146_v52, %v1117_v51 }
 0x4fa   :  { %v1189_v53 = vpop.f32.mrf.mxu2 }
 0x4fb   :  { %v1195_v54 = vadd.f32 %v1189_v53, %v1147_v59 }
 0x4fc   :  { %v1137_v55 = vpop.f32.mrf.mxu0 }
 0x4fd   :  { %v1202_v56 = vadd.f32 %v1277_v63, %v1195_v54  ;;  %v1138_v57 = vadd.f32 %v1137_v55, %v1108_v47 }
 0x4ff   :  { %1284 = vtanh.f32 %v1202_v56  ;;  %v1192_v58 = vadd.f32 %v1180_v48, %v1138_v57 }
 0x501   :  { %v1199_v60 = vadd.f32 %v1277_v63, %v1192_v58 }
 0x503   :  { %1286 = vtanh.f32 %v1199_v60 }
 0x504   :  { %v1140_v61 = vpop.f32.mrf.mxu0 }
 0x505   :  { %v1285_v0 = vpop.eup %1284  ;;  %v1141_v1 = vadd.f32 %v1140_v61, %v1111_v49 }
 0x506   :  { %1210 = vst [vmem:[%s1891_s8 + $0x18] sm:$0xff] %v1285_v0 }
 0x507   :  { %v1193_v62 = vadd.f32 %v1183_v44, %v1141_v1 }
 0x509   :  { %v1287_v2 = vpop.eup %1286  ;;  %v1200_v3 = vadd.f32 %v1277_v63, %v1193_v62 }
 0x50a   :  { %1207 = vst [vmem:[%s1891_s8] sm:$0xff] %v1287_v2 }
 0x50b   :  { %1288 = vtanh.f32 %v1200_v3 }
 0x50c   :  { %v1143_v4 = vpop.f32.mrf.mxu0 }
 0x50d   :  { %v1144_v5 = vadd.f32 %v1143_v4, %v1114_v50 }
 0x50f   :  { %v1194_v6 = vadd.f32 %v1186_v41, %v1144_v5 }
 0x511   :  { %v1289_v7 = vpop.eup %1288  ;;  %v1201_v8 = vadd.f32 %v1277_v63, %v1194_v6 }
 0x512   :  { %1208 = vst [vmem:[%s1891_s8 + $0x8] sm:$0xff] %v1289_v7 }
 0x513   :  { %1290 = vtanh.f32 %v1201_v8 }
 0x519   :  { %v1291_v9 = vpop.eup %1290 }
 0x51a   :  { %1209 = vst [vmem:[%s1891_s8 + $0x10] sm:$0xff] %v1291_v9 }
 0x51b   :  { %1215 = vsyncpa [#allocation4], 1 }

</bundles_post_ra>
